<compile_context>
chip_gen: v5e
topology: v5e:2x2
jax: 0.10.0
libtpu: 0.0.40
codegen_flags: <defaults>
</compile_context>

<pallas_src>
import math

import numpy as np

import jax
import jax.numpy as jnp
from jax.experimental import pallas as pl
from jax.experimental.pallas import tpu as pltpu


# ------------------------------- Pallas kernel -------------------------------

def _qnet_fused_kernel(sel_ref, w1_ref, b1_ref, w2_ref, b2_ref,
                       fw1_ref, fb1_ref, fw2_ref, fb2_ref, o_ref):
    # sel_ref : (n_taps, n_pos*NB, K1)  conv1 patches, dim-1 ordered (r, n)
    # w1_ref  : (K1, C1)                b1_ref : (1, C1)
    # w2_ref  : (n_taps, C1, C2)        b2_ref : (1, C2)
    # fw1_ref : (n_pos*C2, FH)  rows in NHWC-flatten order   fb1_ref : (1, FH)
    # fw2_ref : (FH, A)                 fb2_ref: (1, A)
    # o_ref   : (NB, A)
    n_taps, m, _ = sel_ref.shape
    c2 = w2_ref.shape[2]
    n_pos = fw1_ref.shape[0] // c2
    nb = m // n_pos

    w1 = w1_ref[...]
    b1 = b1_ref[...]

    # conv1 + conv2 fused: row selection commutes with ReLU, so
    # relu(sel_j @ W1 + b1) is exactly conv2's im2col slab for tap j.
    acc = jnp.zeros((m, c2), jnp.float32)
    for j in range(n_taps):                       # static unroll (16 taps)
        p_j = jnp.dot(sel_ref[j], w1, preferred_element_type=jnp.float32)
        p_j = jnp.maximum(p_j + b1, 0.0)
        acc = acc + jnp.dot(p_j, w2_ref[j], preferred_element_type=jnp.float32)
    h2 = jnp.maximum(acc + b2_ref[...], 0.0)      # (n_pos*NB, C2), rows (r, n)

    # fc1 with the NHWC flatten folded in: flat[n] = concat_r h2[r*NB + n].
    fc1 = jnp.zeros((nb, fw1_ref.shape[1]), jnp.float32)
    for r in range(n_pos):                        # static unroll (4 positions)
        fc1 = fc1 + jnp.dot(h2[r * nb:(r + 1) * nb, :],
                            fw1_ref[r * c2:(r + 1) * c2, :],
                            preferred_element_type=jnp.float32)
    fc1 = jnp.maximum(fc1 + fb1_ref[...], 0.0)    # (NB, FH)

    o_ref[...] = (jnp.dot(fc1, fw2_ref[...], preferred_element_type=jnp.float32)
                  + fb2_ref[...])


# ------------------------------ host-side wrapper -----------------------------

def _pick_block_batch(n):
    """Batch block size: prefer >=2 blocks (2 TCs on v7x), cap 64 samples/block."""
    if n <= 1:
        return n
    for blocks in range(2, n + 1):
        if n % blocks == 0 and n // blocks <= 64:
            return n // blocks
    return 1


def prepare_params(p):
    """One-time (trace-time) weight re-layout for the fused kernel."""
    KH1, KW1, C_in, C1 = p['w1'].shape            # (8, 8, 4, 16), HWIO
    KH2, KW2, _, C2 = p['w2'].shape               # (4, 4, 16, 32), HWIO
    in_fc, FH = p['fcw1'].shape
    n_pos = in_fc // C2                           # H2 * W2

    # conv1 weights flattened to the conv_general_dilated_patches channel
    # order (cin, kh, kw).
    w1m = jnp.transpose(p['w1'], (2, 0, 1, 3)).reshape(C_in * KH1 * KW1, C1)
    # conv2 weights: one (C1 -> C2) matrix per tap j = kh*KW2 + kw.
    w2j = p['w2'].reshape(KH2 * KW2, C1, C2)
    # fc1 rows permuted from PyTorch NCHW-flatten order (c, r) to NHWC (r, c).
    fw1 = p['fcw1'].reshape(C2, n_pos, FH).transpose(1, 0, 2).reshape(in_fc, FH)

    return dict(w1m=w1m, b1=p['b1'].reshape(1, C1),
                w2j=w2j, b2=p['b2'].reshape(1, C2),
                fw1=fw1, fb1=p['fcb1'].reshape(1, FH),
                fw2=p['fcw2'], fb2=p['fcb2'].reshape(1, -1))


def qnetwork_forward(x_nchw, prep, *, block_batch=None):
    """Fused QNetwork forward pass. `prep` comes from prepare_params()."""
    N, _, H, W = x_nchw.shape
    K1, C1 = prep['w1m'].shape
    n_taps, _, C2 = prep['w2j'].shape
    in_fc, FH = prep['fw1'].shape
    A = prep['fw2'].shape[1]

    OH1, OW1 = (H - 8) // 4 + 1, (W - 8) // 4 + 1       # conv1: k8, s4
    OH2, OW2 = (OH1 - 4) // 2 + 1, (OW1 - 4) // 2 + 1   # conv2: k4, s2
    n_pos = OH2 * OW2
    assert in_fc == n_pos * C2 and n_taps == 16

    # conv1 im2col as one fused XLA op; output channel order is (cin, kh, kw),
    # which prep['w1m'] matches.
    patches = jax.lax.conv_general_dilated_patches(
        x_nchw, filter_shape=(8, 8), window_strides=(4, 4), padding='VALID',
        dimension_numbers=('NCHW', 'OIHW', 'NHWC'))      # (N, OH1, OW1, K1)

    # For every conv2 tap j=(kh,kw) and output position r=(oh2,ow2), pick the
    # conv1 patch row that tap reads (static-index gather, one XLA op).
    oh1_idx = np.empty((n_taps, n_pos), np.int32)
    ow1_idx = np.empty((n_taps, n_pos), np.int32)
    for j in range(n_taps):
        kh, kw = j // 4, j % 4
        for r in range(n_pos):
            oh2, ow2 = r // OW2, r % OW2
            oh1_idx[j, r] = oh2 * 2 + kh
            ow1_idx[j, r] = ow2 * 2 + kw
    sel = patches[:, oh1_idx, ow1_idx, :]                # (N, n_taps, n_pos, K1)

    nb = block_batch if block_batch is not None else _pick_block_batch(N)
    assert N % nb == 0
    nblk = N // nb
    # dim-2 row order (r, n_local): contiguous per-position blocks for fc1.
    sel = sel.reshape(nblk, nb, n_taps, n_pos, K1)
    sel = sel.transpose(0, 2, 3, 1, 4).reshape(nblk, n_taps, n_pos * nb, K1)

    flops = (2 * N * n_taps * n_pos * K1 * C1
             + 2 * N * n_taps * n_pos * C1 * C2
             + 2 * N * n_pos * C2 * FH
             + 2 * N * FH * A)
    bytes_accessed = 4 * (sel.size + K1 * C1 + C1 + n_taps * C1 * C2 + C2
                          + in_fc * FH + FH + FH * A + A + N * A)

    out = pl.pallas_call(
        _qnet_fused_kernel,
        out_shape=jax.ShapeDtypeStruct((nblk, nb, A), jnp.float32),
        grid=(nblk,),
        in_specs=[
            pl.BlockSpec((pl.Squeezed(), n_taps, n_pos * nb, K1),
                         lambda b: (b, 0, 0, 0)),
            pl.BlockSpec((K1, C1), lambda b: (0, 0)),
            pl.BlockSpec((1, C1), lambda b: (0, 0)),
            pl.BlockSpec((n_taps, C1, C2), lambda b: (0, 0, 0)),
            pl.BlockSpec((1, C2), lambda b: (0, 0)),
            pl.BlockSpec((in_fc, FH), lambda b: (0, 0)),
            pl.BlockSpec((1, FH), lambda b: (0, 0)),
            pl.BlockSpec((FH, A), lambda b: (0, 0)),
            pl.BlockSpec((1, A), lambda b: (0, 0)),
        ],
        out_specs=pl.BlockSpec((pl.Squeezed(), nb, A), lambda b: (b, 0, 0)),
        compiler_params=pltpu.CompilerParams(
            dimension_semantics=("parallel",)),
        cost_estimate=pl.CostEstimate(flops=int(flops), transcendentals=0,
                                      bytes_accessed=int(bytes_accessed)),
    )(sel, prep['w1m'], prep['b1'], prep['w2j'], prep['b2'],
      prep['fw1'], prep['fb1'], prep['fw2'], prep['fb2'])
    return out.reshape(N, A)


# ------------------------- deterministic parameters --------------------------

def init_params(key, input_shape, num_actions):
    C, H, W = input_shape
    ks = jax.random.split(key, 8)

    def kaiming_uniform(k, shape, fan_in):            # relu gain, fan_in mode
        bound = math.sqrt(6.0 / fan_in)
        return jax.random.uniform(k, shape, jnp.float32, -bound, bound)

    def bias_uniform(k, shape, fan_in):               # PyTorch default bias init
        bound = 1.0 / math.sqrt(fan_in)
        return jax.random.uniform(k, shape, jnp.float32, -bound, bound)

    w1 = kaiming_uniform(ks[0], (8, 8, C, 16), fan_in=C * 8 * 8)      # HWIO
    b1 = bias_uniform(ks[1], (16,), C * 8 * 8)
    w2 = kaiming_uniform(ks[2], (4, 4, 16, 32), fan_in=16 * 4 * 4)    # HWIO
    b2 = bias_uniform(ks[3], (32,), 16 * 4 * 4)

    OH1, OW1 = (H - 8) // 4 + 1, (W - 8) // 4 + 1
    OH2, OW2 = (OH1 - 4) // 2 + 1, (OW1 - 4) // 2 + 1
    in_fc = 32 * OH2 * OW2

    fcw1 = kaiming_uniform(ks[4], (in_fc, 256), fan_in=in_fc)   # NCHW-flat rows
    fcb1 = bias_uniform(ks[5], (256,), in_fc)
    fcw2 = kaiming_uniform(ks[6], (256, num_actions), fan_in=256)
    fcb2 = bias_uniform(ks[7], (num_actions,), 256)

    return dict(w1=w1, b1=b1, w2=w2, b2=b2,
                fcw1=fcw1, fcb1=fcb1, fcw2=fcw2, fcb2=fcb2)


# ------------------------------ pure-JAX reference ----------------------------

def ref_forward(x_nchw, p):
    dn = ('NCHW', 'HWIO', 'NCHW')
    h = jax.lax.conv_general_dilated(x_nchw, p['w1'], (4, 4), 'VALID',
                                     dimension_numbers=dn)
    h = jax.nn.relu(h + p['b1'].reshape(1, -1, 1, 1))
    h = jax.lax.conv_general_dilated(h, p['w2'], (2, 2), 'VALID',
                                     dimension_numbers=dn)
    h = jax.nn.relu(h + p['b2'].reshape(1, -1, 1, 1))
    flat = h.reshape(h.shape[0], -1)                   # PyTorch NCHW flatten
    h = jax.nn.relu(flat @ p['fcw1'] + p['fcb1'])
    return h @ p['fcw2'] + p['fcb2']


# ------------------------------------ main ------------------------------------

if __name__ == "__main__":
    key = jax.random.PRNGKey(0)
    k_param, k_x = jax.random.split(key)

    input_shape = (4, 32, 32)    # (C, H, W) -> conv1: 7x7, conv2: 2x2, in_fc=128
    num_actions = 6
    batch = 2

    params = init_params(k_param, input_shape, num_actions)
    x = jax.random.normal(k_x, (batch,) + input_shape, dtype=jnp.float32)

    prep = prepare_params(params)          # one-time weight re-layout
    fwd = jax.jit(qnetwork_forward)

    out = jax.block_until_ready(fwd(x, prep))
    ref = jax.block_until_ready(ref_forward(x, params))

    assert out.shape == (batch, num_actions), out.shape
    assert jnp.allclose(out, ref, rtol=1e-4, atol=1e-4), (out, ref)

    print("KERNEL_OK")
</pallas_src>

<mosaic_0001>
module attributes {stable_mosaic.version = 11 : i64} {
  func.func @_qnet_fused_kernel(%arg0: i32, %arg1: memref<1x16x4x256xf32, #tpu.memory_space<vmem>>, %arg2: memref<256x16xf32, #tpu.memory_space<vmem>>, %arg3: memref<1x16xf32, #tpu.memory_space<vmem>>, %arg4: memref<16x16x32xf32, #tpu.memory_space<vmem>>, %arg5: memref<1x32xf32, #tpu.memory_space<vmem>>, %arg6: memref<128x256xf32, #tpu.memory_space<vmem>>, %arg7: memref<1x256xf32, #tpu.memory_space<vmem>>, %arg8: memref<256x6xf32, #tpu.memory_space<vmem>>, %arg9: memref<1x6xf32, #tpu.memory_space<vmem>>, %arg10: memref<1x1x6xf32, #tpu.memory_space<vmem>>) attributes {dimension_semantics = [#tpu.dimension_semantics<parallel>], iteration_bounds = array<i64: 2>, scalar_prefetch = 0 : i64, scratch_operands = 0 : i64, tpu.core_type = #tpu.core_type<tc>, window_params = [{transform_indices = @transform_0, window_bounds = array<i64: 1, 16, 4, 256>}, {pipeline_mode = #tpu.pipeline_mode<synchronous>, transform_indices = @transform_1, window_bounds = array<i64: 256, 16>}, {pipeline_mode = #tpu.pipeline_mode<synchronous>, transform_indices = @transform_2, window_bounds = array<i64: 1, 16>}, {pipeline_mode = #tpu.pipeline_mode<synchronous>, transform_indices = @transform_3, window_bounds = array<i64: 16, 16, 32>}, {pipeline_mode = #tpu.pipeline_mode<synchronous>, transform_indices = @transform_4, window_bounds = array<i64: 1, 32>}, {pipeline_mode = #tpu.pipeline_mode<synchronous>, transform_indices = @transform_5, window_bounds = array<i64: 128, 256>}, {pipeline_mode = #tpu.pipeline_mode<synchronous>, transform_indices = @transform_6, window_bounds = array<i64: 1, 256>}, {pipeline_mode = #tpu.pipeline_mode<synchronous>, transform_indices = @transform_7, window_bounds = array<i64: 256, 6>}, {pipeline_mode = #tpu.pipeline_mode<synchronous>, transform_indices = @transform_8, window_bounds = array<i64: 1, 6>}, {transform_indices = @transform_9, window_bounds = array<i64: 1, 1, 6>}]} {
    %c0 = arith.constant 0 : index
    %c0_0 = arith.constant 0 : index
    %0 = vector.load %arg2[%c0, %c0_0] : memref<256x16xf32, #tpu.memory_space<vmem>>, vector<256x16xf32>
    %c0_1 = arith.constant 0 : index
    %c0_2 = arith.constant 0 : index
    %1 = vector.load %arg3[%c0_1, %c0_2] : memref<1x16xf32, #tpu.memory_space<vmem>>, vector<1x16xf32>
    %cst = arith.constant 0.000000e+00 : f32
    %2 = vector.broadcast %cst : f32 to vector<4x32xf32>
    %c0_3 = arith.constant 0 : index
    %c0_4 = arith.constant 0 : index
    %c0_5 = arith.constant 0 : index
    %c0_6 = arith.constant 0 : index
    %3 = vector.load %arg1[%c0_3, %c0_4, %c0_5, %c0_6] : memref<1x16x4x256xf32, #tpu.memory_space<vmem>>, vector<1x1x4x256xf32>
    %4 = vector.shape_cast %3 : vector<1x1x4x256xf32> to vector<4x256xf32>
    %cst_7 = arith.constant dense<0.000000e+00> : vector<4x16xf32>
    %5 = tpu.matmul %4, %0, %cst_7 {dimension_numbers = #tpu.dot_dimension_numbers<[1], [0], [0], [1], [0, 0, 1, 1], [], []>} : vector<4x256xf32>, vector<256x16xf32>, vector<4x16xf32> -> vector<4x16xf32>
    %6 = vector.broadcast %1 : vector<1x16xf32> to vector<4x16xf32>
    %7 = arith.addf %5, %6 : vector<4x16xf32>
    %cst_8 = arith.constant 0.000000e+00 : f32
    %8 = vector.broadcast %cst_8 : f32 to vector<4x16xf32>
    %9 = arith.maximumf %7, %8 : vector<4x16xf32>
    %c0_9 = arith.constant 0 : index
    %c0_10 = arith.constant 0 : index
    %c0_11 = arith.constant 0 : index
    %10 = vector.load %arg4[%c0_9, %c0_10, %c0_11] : memref<16x16x32xf32, #tpu.memory_space<vmem>>, vector<1x16x32xf32>
    %11 = vector.shape_cast %10 : vector<1x16x32xf32> to vector<16x32xf32>
    %cst_12 = arith.constant dense<0.000000e+00> : vector<4x32xf32>
    %12 = tpu.matmul %9, %11, %cst_12 {dimension_numbers = #tpu.dot_dimension_numbers<[1], [0], [0], [1], [0, 0, 1, 1], [], []>} : vector<4x16xf32>, vector<16x32xf32>, vector<4x32xf32> -> vector<4x32xf32>
    %13 = arith.addf %2, %12 : vector<4x32xf32>
    %c0_13 = arith.constant 0 : index
    %c1 = arith.constant 1 : index
    %c0_14 = arith.constant 0 : index
    %c0_15 = arith.constant 0 : index
    %14 = vector.load %arg1[%c0_13, %c1, %c0_14, %c0_15] : memref<1x16x4x256xf32, #tpu.memory_space<vmem>>, vector<1x1x4x256xf32>
    %15 = vector.shape_cast %14 : vector<1x1x4x256xf32> to vector<4x256xf32>
    %cst_16 = arith.constant dense<0.000000e+00> : vector<4x16xf32>
    %16 = tpu.matmul %15, %0, %cst_16 {dimension_numbers = #tpu.dot_dimension_numbers<[1], [0], [0], [1], [0, 0, 1, 1], [], []>} : vector<4x256xf32>, vector<256x16xf32>, vector<4x16xf32> -> vector<4x16xf32>
    %17 = vector.broadcast %1 : vector<1x16xf32> to vector<4x16xf32>
    %18 = arith.addf %16, %17 : vector<4x16xf32>
    %cst_17 = arith.constant 0.000000e+00 : f32
    %19 = vector.broadcast %cst_17 : f32 to vector<4x16xf32>
    %20 = arith.maximumf %18, %19 : vector<4x16xf32>
    %c1_18 = arith.constant 1 : index
    %c0_19 = arith.constant 0 : index
    %c0_20 = arith.constant 0 : index
    %21 = vector.load %arg4[%c1_18, %c0_19, %c0_20] : memref<16x16x32xf32, #tpu.memory_space<vmem>>, vector<1x16x32xf32>
    %22 = vector.shape_cast %21 : vector<1x16x32xf32> to vector<16x32xf32>
    %cst_21 = arith.constant dense<0.000000e+00> : vector<4x32xf32>
    %23 = tpu.matmul %20, %22, %cst_21 {dimension_numbers = #tpu.dot_dimension_numbers<[1], [0], [0], [1], [0, 0, 1, 1], [], []>} : vector<4x16xf32>, vector<16x32xf32>, vector<4x32xf32> -> vector<4x32xf32>
    %24 = arith.addf %13, %23 : vector<4x32xf32>
    %c0_22 = arith.constant 0 : index
    %c2 = arith.constant 2 : index
    %c0_23 = arith.constant 0 : index
    %c0_24 = arith.constant 0 : index
    %25 = vector.load %arg1[%c0_22, %c2, %c0_23, %c0_24] : memref<1x16x4x256xf32, #tpu.memory_space<vmem>>, vector<1x1x4x256xf32>
    %26 = vector.shape_cast %25 : vector<1x1x4x256xf32> to vector<4x256xf32>
    %cst_25 = arith.constant dense<0.000000e+00> : vector<4x16xf32>
    %27 = tpu.matmul %26, %0, %cst_25 {dimension_numbers = #tpu.dot_dimension_numbers<[1], [0], [0], [1], [0, 0, 1, 1], [], []>} : vector<4x256xf32>, vector<256x16xf32>, vector<4x16xf32> -> vector<4x16xf32>
    %28 = vector.broadcast %1 : vector<1x16xf32> to vector<4x16xf32>
    %29 = arith.addf %27, %28 : vector<4x16xf32>
    %cst_26 = arith.constant 0.000000e+00 : f32
    %30 = vector.broadcast %cst_26 : f32 to vector<4x16xf32>
    %31 = arith.maximumf %29, %30 : vector<4x16xf32>
    %c2_27 = arith.constant 2 : index
    %c0_28 = arith.constant 0 : index
    %c0_29 = arith.constant 0 : index
    %32 = vector.load %arg4[%c2_27, %c0_28, %c0_29] : memref<16x16x32xf32, #tpu.memory_space<vmem>>, vector<1x16x32xf32>
    %33 = vector.shape_cast %32 : vector<1x16x32xf32> to vector<16x32xf32>
    %cst_30 = arith.constant dense<0.000000e+00> : vector<4x32xf32>
    %34 = tpu.matmul %31, %33, %cst_30 {dimension_numbers = #tpu.dot_dimension_numbers<[1], [0], [0], [1], [0, 0, 1, 1], [], []>} : vector<4x16xf32>, vector<16x32xf32>, vector<4x32xf32> -> vector<4x32xf32>
    %35 = arith.addf %24, %34 : vector<4x32xf32>
    %c0_31 = arith.constant 0 : index
    %c3 = arith.constant 3 : index
    %c0_32 = arith.constant 0 : index
    %c0_33 = arith.constant 0 : index
    %36 = vector.load %arg1[%c0_31, %c3, %c0_32, %c0_33] : memref<1x16x4x256xf32, #tpu.memory_space<vmem>>, vector<1x1x4x256xf32>
    %37 = vector.shape_cast %36 : vector<1x1x4x256xf32> to vector<4x256xf32>
    %cst_34 = arith.constant dense<0.000000e+00> : vector<4x16xf32>
    %38 = tpu.matmul %37, %0, %cst_34 {dimension_numbers = #tpu.dot_dimension_numbers<[1], [0], [0], [1], [0, 0, 1, 1], [], []>} : vector<4x256xf32>, vector<256x16xf32>, vector<4x16xf32> -> vector<4x16xf32>
    %39 = vector.broadcast %1 : vector<1x16xf32> to vector<4x16xf32>
    %40 = arith.addf %38, %39 : vector<4x16xf32>
    %cst_35 = arith.constant 0.000000e+00 : f32
    %41 = vector.broadcast %cst_35 : f32 to vector<4x16xf32>
    %42 = arith.maximumf %40, %41 : vector<4x16xf32>
    %c3_36 = arith.constant 3 : index
    %c0_37 = arith.constant 0 : index
    %c0_38 = arith.constant 0 : index
    %43 = vector.load %arg4[%c3_36, %c0_37, %c0_38] : memref<16x16x32xf32, #tpu.memory_space<vmem>>, vector<1x16x32xf32>
    %44 = vector.shape_cast %43 : vector<1x16x32xf32> to vector<16x32xf32>
    %cst_39 = arith.constant dense<0.000000e+00> : vector<4x32xf32>
    %45 = tpu.matmul %42, %44, %cst_39 {dimension_numbers = #tpu.dot_dimension_numbers<[1], [0], [0], [1], [0, 0, 1, 1], [], []>} : vector<4x16xf32>, vector<16x32xf32>, vector<4x32xf32> -> vector<4x32xf32>
    %46 = arith.addf %35, %45 : vector<4x32xf32>
    %c0_40 = arith.constant 0 : index
    %c4 = arith.constant 4 : index
    %c0_41 = arith.constant 0 : index
    %c0_42 = arith.constant 0 : index
    %47 = vector.load %arg1[%c0_40, %c4, %c0_41, %c0_42] : memref<1x16x4x256xf32, #tpu.memory_space<vmem>>, vector<1x1x4x256xf32>
    %48 = vector.shape_cast %47 : vector<1x1x4x256xf32> to vector<4x256xf32>
    %cst_43 = arith.constant dense<0.000000e+00> : vector<4x16xf32>
    %49 = tpu.matmul %48, %0, %cst_43 {dimension_numbers = #tpu.dot_dimension_numbers<[1], [0], [0], [1], [0, 0, 1, 1], [], []>} : vector<4x256xf32>, vector<256x16xf32>, vector<4x16xf32> -> vector<4x16xf32>
    %50 = vector.broadcast %1 : vector<1x16xf32> to vector<4x16xf32>
    %51 = arith.addf %49, %50 : vector<4x16xf32>
    %cst_44 = arith.constant 0.000000e+00 : f32
    %52 = vector.broadcast %cst_44 : f32 to vector<4x16xf32>
    %53 = arith.maximumf %51, %52 : vector<4x16xf32>
    %c4_45 = arith.constant 4 : index
    %c0_46 = arith.constant 0 : index
    %c0_47 = arith.constant 0 : index
    %54 = vector.load %arg4[%c4_45, %c0_46, %c0_47] : memref<16x16x32xf32, #tpu.memory_space<vmem>>, vector<1x16x32xf32>
    %55 = vector.shape_cast %54 : vector<1x16x32xf32> to vector<16x32xf32>
    %cst_48 = arith.constant dense<0.000000e+00> : vector<4x32xf32>
    %56 = tpu.matmul %53, %55, %cst_48 {dimension_numbers = #tpu.dot_dimension_numbers<[1], [0], [0], [1], [0, 0, 1, 1], [], []>} : vector<4x16xf32>, vector<16x32xf32>, vector<4x32xf32> -> vector<4x32xf32>
    %57 = arith.addf %46, %56 : vector<4x32xf32>
    %c0_49 = arith.constant 0 : index
    %c5 = arith.constant 5 : index
    %c0_50 = arith.constant 0 : index
    %c0_51 = arith.constant 0 : index
    %58 = vector.load %arg1[%c0_49, %c5, %c0_50, %c0_51] : memref<1x16x4x256xf32, #tpu.memory_space<vmem>>, vector<1x1x4x256xf32>
    %59 = vector.shape_cast %58 : vector<1x1x4x256xf32> to vector<4x256xf32>
    %cst_52 = arith.constant dense<0.000000e+00> : vector<4x16xf32>
    %60 = tpu.matmul %59, %0, %cst_52 {dimension_numbers = #tpu.dot_dimension_numbers<[1], [0], [0], [1], [0, 0, 1, 1], [], []>} : vector<4x256xf32>, vector<256x16xf32>, vector<4x16xf32> -> vector<4x16xf32>
    %61 = vector.broadcast %1 : vector<1x16xf32> to vector<4x16xf32>
    %62 = arith.addf %60, %61 : vector<4x16xf32>
    %cst_53 = arith.constant 0.000000e+00 : f32
    %63 = vector.broadcast %cst_53 : f32 to vector<4x16xf32>
    %64 = arith.maximumf %62, %63 : vector<4x16xf32>
    %c5_54 = arith.constant 5 : index
    %c0_55 = arith.constant 0 : index
    %c0_56 = arith.constant 0 : index
    %65 = vector.load %arg4[%c5_54, %c0_55, %c0_56] : memref<16x16x32xf32, #tpu.memory_space<vmem>>, vector<1x16x32xf32>
    %66 = vector.shape_cast %65 : vector<1x16x32xf32> to vector<16x32xf32>
    %cst_57 = arith.constant dense<0.000000e+00> : vector<4x32xf32>
    %67 = tpu.matmul %64, %66, %cst_57 {dimension_numbers = #tpu.dot_dimension_numbers<[1], [0], [0], [1], [0, 0, 1, 1], [], []>} : vector<4x16xf32>, vector<16x32xf32>, vector<4x32xf32> -> vector<4x32xf32>
    %68 = arith.addf %57, %67 : vector<4x32xf32>
    %c0_58 = arith.constant 0 : index
    %c6 = arith.constant 6 : index
    %c0_59 = arith.constant 0 : index
    %c0_60 = arith.constant 0 : index
    %69 = vector.load %arg1[%c0_58, %c6, %c0_59, %c0_60] : memref<1x16x4x256xf32, #tpu.memory_space<vmem>>, vector<1x1x4x256xf32>
    %70 = vector.shape_cast %69 : vector<1x1x4x256xf32> to vector<4x256xf32>
    %cst_61 = arith.constant dense<0.000000e+00> : vector<4x16xf32>
    %71 = tpu.matmul %70, %0, %cst_61 {dimension_numbers = #tpu.dot_dimension_numbers<[1], [0], [0], [1], [0, 0, 1, 1], [], []>} : vector<4x256xf32>, vector<256x16xf32>, vector<4x16xf32> -> vector<4x16xf32>
    %72 = vector.broadcast %1 : vector<1x16xf32> to vector<4x16xf32>
    %73 = arith.addf %71, %72 : vector<4x16xf32>
    %cst_62 = arith.constant 0.000000e+00 : f32
    %74 = vector.broadcast %cst_62 : f32 to vector<4x16xf32>
    %75 = arith.maximumf %73, %74 : vector<4x16xf32>
    %c6_63 = arith.constant 6 : index
    %c0_64 = arith.constant 0 : index
    %c0_65 = arith.constant 0 : index
    %76 = vector.load %arg4[%c6_63, %c0_64, %c0_65] : memref<16x16x32xf32, #tpu.memory_space<vmem>>, vector<1x16x32xf32>
    %77 = vector.shape_cast %76 : vector<1x16x32xf32> to vector<16x32xf32>
    %cst_66 = arith.constant dense<0.000000e+00> : vector<4x32xf32>
    %78 = tpu.matmul %75, %77, %cst_66 {dimension_numbers = #tpu.dot_dimension_numbers<[1], [0], [0], [1], [0, 0, 1, 1], [], []>} : vector<4x16xf32>, vector<16x32xf32>, vector<4x32xf32> -> vector<4x32xf32>
    %79 = arith.addf %68, %78 : vector<4x32xf32>
    %c0_67 = arith.constant 0 : index
    %c7 = arith.constant 7 : index
    %c0_68 = arith.constant 0 : index
    %c0_69 = arith.constant 0 : index
    %80 = vector.load %arg1[%c0_67, %c7, %c0_68, %c0_69] : memref<1x16x4x256xf32, #tpu.memory_space<vmem>>, vector<1x1x4x256xf32>
    %81 = vector.shape_cast %80 : vector<1x1x4x256xf32> to vector<4x256xf32>
    %cst_70 = arith.constant dense<0.000000e+00> : vector<4x16xf32>
    %82 = tpu.matmul %81, %0, %cst_70 {dimension_numbers = #tpu.dot_dimension_numbers<[1], [0], [0], [1], [0, 0, 1, 1], [], []>} : vector<4x256xf32>, vector<256x16xf32>, vector<4x16xf32> -> vector<4x16xf32>
    %83 = vector.broadcast %1 : vector<1x16xf32> to vector<4x16xf32>
    %84 = arith.addf %82, %83 : vector<4x16xf32>
    %cst_71 = arith.constant 0.000000e+00 : f32
    %85 = vector.broadcast %cst_71 : f32 to vector<4x16xf32>
    %86 = arith.maximumf %84, %85 : vector<4x16xf32>
    %c7_72 = arith.constant 7 : index
    %c0_73 = arith.constant 0 : index
    %c0_74 = arith.constant 0 : index
    %87 = vector.load %arg4[%c7_72, %c0_73, %c0_74] : memref<16x16x32xf32, #tpu.memory_space<vmem>>, vector<1x16x32xf32>
    %88 = vector.shape_cast %87 : vector<1x16x32xf32> to vector<16x32xf32>
    %cst_75 = arith.constant dense<0.000000e+00> : vector<4x32xf32>
    %89 = tpu.matmul %86, %88, %cst_75 {dimension_numbers = #tpu.dot_dimension_numbers<[1], [0], [0], [1], [0, 0, 1, 1], [], []>} : vector<4x16xf32>, vector<16x32xf32>, vector<4x32xf32> -> vector<4x32xf32>
    %90 = arith.addf %79, %89 : vector<4x32xf32>
    %c0_76 = arith.constant 0 : index
    %c8 = arith.constant 8 : index
    %c0_77 = arith.constant 0 : index
    %c0_78 = arith.constant 0 : index
    %91 = vector.load %arg1[%c0_76, %c8, %c0_77, %c0_78] : memref<1x16x4x256xf32, #tpu.memory_space<vmem>>, vector<1x1x4x256xf32>
    %92 = vector.shape_cast %91 : vector<1x1x4x256xf32> to vector<4x256xf32>
    %cst_79 = arith.constant dense<0.000000e+00> : vector<4x16xf32>
    %93 = tpu.matmul %92, %0, %cst_79 {dimension_numbers = #tpu.dot_dimension_numbers<[1], [0], [0], [1], [0, 0, 1, 1], [], []>} : vector<4x256xf32>, vector<256x16xf32>, vector<4x16xf32> -> vector<4x16xf32>
    %94 = vector.broadcast %1 : vector<1x16xf32> to vector<4x16xf32>
    %95 = arith.addf %93, %94 : vector<4x16xf32>
    %cst_80 = arith.constant 0.000000e+00 : f32
    %96 = vector.broadcast %cst_80 : f32 to vector<4x16xf32>
    %97 = arith.maximumf %95, %96 : vector<4x16xf32>
    %c8_81 = arith.constant 8 : index
    %c0_82 = arith.constant 0 : index
    %c0_83 = arith.constant 0 : index
    %98 = vector.load %arg4[%c8_81, %c0_82, %c0_83] : memref<16x16x32xf32, #tpu.memory_space<vmem>>, vector<1x16x32xf32>
    %99 = vector.shape_cast %98 : vector<1x16x32xf32> to vector<16x32xf32>
    %cst_84 = arith.constant dense<0.000000e+00> : vector<4x32xf32>
    %100 = tpu.matmul %97, %99, %cst_84 {dimension_numbers = #tpu.dot_dimension_numbers<[1], [0], [0], [1], [0, 0, 1, 1], [], []>} : vector<4x16xf32>, vector<16x32xf32>, vector<4x32xf32> -> vector<4x32xf32>
    %101 = arith.addf %90, %100 : vector<4x32xf32>
    %c0_85 = arith.constant 0 : index
    %c9 = arith.constant 9 : index
    %c0_86 = arith.constant 0 : index
    %c0_87 = arith.constant 0 : index
    %102 = vector.load %arg1[%c0_85, %c9, %c0_86, %c0_87] : memref<1x16x4x256xf32, #tpu.memory_space<vmem>>, vector<1x1x4x256xf32>
    %103 = vector.shape_cast %102 : vector<1x1x4x256xf32> to vector<4x256xf32>
    %cst_88 = arith.constant dense<0.000000e+00> : vector<4x16xf32>
    %104 = tpu.matmul %103, %0, %cst_88 {dimension_numbers = #tpu.dot_dimension_numbers<[1], [0], [0], [1], [0, 0, 1, 1], [], []>} : vector<4x256xf32>, vector<256x16xf32>, vector<4x16xf32> -> vector<4x16xf32>
    %105 = vector.broadcast %1 : vector<1x16xf32> to vector<4x16xf32>
    %106 = arith.addf %104, %105 : vector<4x16xf32>
    %cst_89 = arith.constant 0.000000e+00 : f32
    %107 = vector.broadcast %cst_89 : f32 to vector<4x16xf32>
    %108 = arith.maximumf %106, %107 : vector<4x16xf32>
    %c9_90 = arith.constant 9 : index
    %c0_91 = arith.constant 0 : index
    %c0_92 = arith.constant 0 : index
    %109 = vector.load %arg4[%c9_90, %c0_91, %c0_92] : memref<16x16x32xf32, #tpu.memory_space<vmem>>, vector<1x16x32xf32>
    %110 = vector.shape_cast %109 : vector<1x16x32xf32> to vector<16x32xf32>
    %cst_93 = arith.constant dense<0.000000e+00> : vector<4x32xf32>
    %111 = tpu.matmul %108, %110, %cst_93 {dimension_numbers = #tpu.dot_dimension_numbers<[1], [0], [0], [1], [0, 0, 1, 1], [], []>} : vector<4x16xf32>, vector<16x32xf32>, vector<4x32xf32> -> vector<4x32xf32>
    %112 = arith.addf %101, %111 : vector<4x32xf32>
    %c0_94 = arith.constant 0 : index
    %c10 = arith.constant 10 : index
    %c0_95 = arith.constant 0 : index
    %c0_96 = arith.constant 0 : index
    %113 = vector.load %arg1[%c0_94, %c10, %c0_95, %c0_96] : memref<1x16x4x256xf32, #tpu.memory_space<vmem>>, vector<1x1x4x256xf32>
    %114 = vector.shape_cast %113 : vector<1x1x4x256xf32> to vector<4x256xf32>
    %cst_97 = arith.constant dense<0.000000e+00> : vector<4x16xf32>
    %115 = tpu.matmul %114, %0, %cst_97 {dimension_numbers = #tpu.dot_dimension_numbers<[1], [0], [0], [1], [0, 0, 1, 1], [], []>} : vector<4x256xf32>, vector<256x16xf32>, vector<4x16xf32> -> vector<4x16xf32>
    %116 = vector.broadcast %1 : vector<1x16xf32> to vector<4x16xf32>
    %117 = arith.addf %115, %116 : vector<4x16xf32>
    %cst_98 = arith.constant 0.000000e+00 : f32
    %118 = vector.broadcast %cst_98 : f32 to vector<4x16xf32>
    %119 = arith.maximumf %117, %118 : vector<4x16xf32>
    %c10_99 = arith.constant 10 : index
    %c0_100 = arith.constant 0 : index
    %c0_101 = arith.constant 0 : index
    %120 = vector.load %arg4[%c10_99, %c0_100, %c0_101] : memref<16x16x32xf32, #tpu.memory_space<vmem>>, vector<1x16x32xf32>
    %121 = vector.shape_cast %120 : vector<1x16x32xf32> to vector<16x32xf32>
    %cst_102 = arith.constant dense<0.000000e+00> : vector<4x32xf32>
    %122 = tpu.matmul %119, %121, %cst_102 {dimension_numbers = #tpu.dot_dimension_numbers<[1], [0], [0], [1], [0, 0, 1, 1], [], []>} : vector<4x16xf32>, vector<16x32xf32>, vector<4x32xf32> -> vector<4x32xf32>
    %123 = arith.addf %112, %122 : vector<4x32xf32>
    %c0_103 = arith.constant 0 : index
    %c11 = arith.constant 11 : index
    %c0_104 = arith.constant 0 : index
    %c0_105 = arith.constant 0 : index
    %124 = vector.load %arg1[%c0_103, %c11, %c0_104, %c0_105] : memref<1x16x4x256xf32, #tpu.memory_space<vmem>>, vector<1x1x4x256xf32>
    %125 = vector.shape_cast %124 : vector<1x1x4x256xf32> to vector<4x256xf32>
    %cst_106 = arith.constant dense<0.000000e+00> : vector<4x16xf32>
    %126 = tpu.matmul %125, %0, %cst_106 {dimension_numbers = #tpu.dot_dimension_numbers<[1], [0], [0], [1], [0, 0, 1, 1], [], []>} : vector<4x256xf32>, vector<256x16xf32>, vector<4x16xf32> -> vector<4x16xf32>
    %127 = vector.broadcast %1 : vector<1x16xf32> to vector<4x16xf32>
    %128 = arith.addf %126, %127 : vector<4x16xf32>
    %cst_107 = arith.constant 0.000000e+00 : f32
    %129 = vector.broadcast %cst_107 : f32 to vector<4x16xf32>
    %130 = arith.maximumf %128, %129 : vector<4x16xf32>
    %c11_108 = arith.constant 11 : index
    %c0_109 = arith.constant 0 : index
    %c0_110 = arith.constant 0 : index
    %131 = vector.load %arg4[%c11_108, %c0_109, %c0_110] : memref<16x16x32xf32, #tpu.memory_space<vmem>>, vector<1x16x32xf32>
    %132 = vector.shape_cast %131 : vector<1x16x32xf32> to vector<16x32xf32>
    %cst_111 = arith.constant dense<0.000000e+00> : vector<4x32xf32>
    %133 = tpu.matmul %130, %132, %cst_111 {dimension_numbers = #tpu.dot_dimension_numbers<[1], [0], [0], [1], [0, 0, 1, 1], [], []>} : vector<4x16xf32>, vector<16x32xf32>, vector<4x32xf32> -> vector<4x32xf32>
    %134 = arith.addf %123, %133 : vector<4x32xf32>
    %c0_112 = arith.constant 0 : index
    %c12 = arith.constant 12 : index
    %c0_113 = arith.constant 0 : index
    %c0_114 = arith.constant 0 : index
    %135 = vector.load %arg1[%c0_112, %c12, %c0_113, %c0_114] : memref<1x16x4x256xf32, #tpu.memory_space<vmem>>, vector<1x1x4x256xf32>
    %136 = vector.shape_cast %135 : vector<1x1x4x256xf32> to vector<4x256xf32>
    %cst_115 = arith.constant dense<0.000000e+00> : vector<4x16xf32>
    %137 = tpu.matmul %136, %0, %cst_115 {dimension_numbers = #tpu.dot_dimension_numbers<[1], [0], [0], [1], [0, 0, 1, 1], [], []>} : vector<4x256xf32>, vector<256x16xf32>, vector<4x16xf32> -> vector<4x16xf32>
    %138 = vector.broadcast %1 : vector<1x16xf32> to vector<4x16xf32>
    %139 = arith.addf %137, %138 : vector<4x16xf32>
    %cst_116 = arith.constant 0.000000e+00 : f32
    %140 = vector.broadcast %cst_116 : f32 to vector<4x16xf32>
    %141 = arith.maximumf %139, %140 : vector<4x16xf32>
    %c12_117 = arith.constant 12 : index
    %c0_118 = arith.constant 0 : index
    %c0_119 = arith.constant 0 : index
    %142 = vector.load %arg4[%c12_117, %c0_118, %c0_119] : memref<16x16x32xf32, #tpu.memory_space<vmem>>, vector<1x16x32xf32>
    %143 = vector.shape_cast %142 : vector<1x16x32xf32> to vector<16x32xf32>
    %cst_120 = arith.constant dense<0.000000e+00> : vector<4x32xf32>
    %144 = tpu.matmul %141, %143, %cst_120 {dimension_numbers = #tpu.dot_dimension_numbers<[1], [0], [0], [1], [0, 0, 1, 1], [], []>} : vector<4x16xf32>, vector<16x32xf32>, vector<4x32xf32> -> vector<4x32xf32>
    %145 = arith.addf %134, %144 : vector<4x32xf32>
    %c0_121 = arith.constant 0 : index
    %c13 = arith.constant 13 : index
    %c0_122 = arith.constant 0 : index
    %c0_123 = arith.constant 0 : index
    %146 = vector.load %arg1[%c0_121, %c13, %c0_122, %c0_123] : memref<1x16x4x256xf32, #tpu.memory_space<vmem>>, vector<1x1x4x256xf32>
    %147 = vector.shape_cast %146 : vector<1x1x4x256xf32> to vector<4x256xf32>
    %cst_124 = arith.constant dense<0.000000e+00> : vector<4x16xf32>
    %148 = tpu.matmul %147, %0, %cst_124 {dimension_numbers = #tpu.dot_dimension_numbers<[1], [0], [0], [1], [0, 0, 1, 1], [], []>} : vector<4x256xf32>, vector<256x16xf32>, vector<4x16xf32> -> vector<4x16xf32>
    %149 = vector.broadcast %1 : vector<1x16xf32> to vector<4x16xf32>
    %150 = arith.addf %148, %149 : vector<4x16xf32>
    %cst_125 = arith.constant 0.000000e+00 : f32
    %151 = vector.broadcast %cst_125 : f32 to vector<4x16xf32>
    %152 = arith.maximumf %150, %151 : vector<4x16xf32>
    %c13_126 = arith.constant 13 : index
    %c0_127 = arith.constant 0 : index
    %c0_128 = arith.constant 0 : index
    %153 = vector.load %arg4[%c13_126, %c0_127, %c0_128] : memref<16x16x32xf32, #tpu.memory_space<vmem>>, vector<1x16x32xf32>
    %154 = vector.shape_cast %153 : vector<1x16x32xf32> to vector<16x32xf32>
    %cst_129 = arith.constant dense<0.000000e+00> : vector<4x32xf32>
    %155 = tpu.matmul %152, %154, %cst_129 {dimension_numbers = #tpu.dot_dimension_numbers<[1], [0], [0], [1], [0, 0, 1, 1], [], []>} : vector<4x16xf32>, vector<16x32xf32>, vector<4x32xf32> -> vector<4x32xf32>
    %156 = arith.addf %145, %155 : vector<4x32xf32>
    %c0_130 = arith.constant 0 : index
    %c14 = arith.constant 14 : index
    %c0_131 = arith.constant 0 : index
    %c0_132 = arith.constant 0 : index
    %157 = vector.load %arg1[%c0_130, %c14, %c0_131, %c0_132] : memref<1x16x4x256xf32, #tpu.memory_space<vmem>>, vector<1x1x4x256xf32>
    %158 = vector.shape_cast %157 : vector<1x1x4x256xf32> to vector<4x256xf32>
    %cst_133 = arith.constant dense<0.000000e+00> : vector<4x16xf32>
    %159 = tpu.matmul %158, %0, %cst_133 {dimension_numbers = #tpu.dot_dimension_numbers<[1], [0], [0], [1], [0, 0, 1, 1], [], []>} : vector<4x256xf32>, vector<256x16xf32>, vector<4x16xf32> -> vector<4x16xf32>
    %160 = vector.broadcast %1 : vector<1x16xf32> to vector<4x16xf32>
    %161 = arith.addf %159, %160 : vector<4x16xf32>
    %cst_134 = arith.constant 0.000000e+00 : f32
    %162 = vector.broadcast %cst_134 : f32 to vector<4x16xf32>
    %163 = arith.maximumf %161, %162 : vector<4x16xf32>
    %c14_135 = arith.constant 14 : index
    %c0_136 = arith.constant 0 : index
    %c0_137 = arith.constant 0 : index
    %164 = vector.load %arg4[%c14_135, %c0_136, %c0_137] : memref<16x16x32xf32, #tpu.memory_space<vmem>>, vector<1x16x32xf32>
    %165 = vector.shape_cast %164 : vector<1x16x32xf32> to vector<16x32xf32>
    %cst_138 = arith.constant dense<0.000000e+00> : vector<4x32xf32>
    %166 = tpu.matmul %163, %165, %cst_138 {dimension_numbers = #tpu.dot_dimension_numbers<[1], [0], [0], [1], [0, 0, 1, 1], [], []>} : vector<4x16xf32>, vector<16x32xf32>, vector<4x32xf32> -> vector<4x32xf32>
    %167 = arith.addf %156, %166 : vector<4x32xf32>
    %c0_139 = arith.constant 0 : index
    %c15 = arith.constant 15 : index
    %c0_140 = arith.constant 0 : index
    %c0_141 = arith.constant 0 : index
    %168 = vector.load %arg1[%c0_139, %c15, %c0_140, %c0_141] : memref<1x16x4x256xf32, #tpu.memory_space<vmem>>, vector<1x1x4x256xf32>
    %169 = vector.shape_cast %168 : vector<1x1x4x256xf32> to vector<4x256xf32>
    %cst_142 = arith.constant dense<0.000000e+00> : vector<4x16xf32>
    %170 = tpu.matmul %169, %0, %cst_142 {dimension_numbers = #tpu.dot_dimension_numbers<[1], [0], [0], [1], [0, 0, 1, 1], [], []>} : vector<4x256xf32>, vector<256x16xf32>, vector<4x16xf32> -> vector<4x16xf32>
    %171 = vector.broadcast %1 : vector<1x16xf32> to vector<4x16xf32>
    %172 = arith.addf %170, %171 : vector<4x16xf32>
    %cst_143 = arith.constant 0.000000e+00 : f32
    %173 = vector.broadcast %cst_143 : f32 to vector<4x16xf32>
    %174 = arith.maximumf %172, %173 : vector<4x16xf32>
    %c15_144 = arith.constant 15 : index
    %c0_145 = arith.constant 0 : index
    %c0_146 = arith.constant 0 : index
    %175 = vector.load %arg4[%c15_144, %c0_145, %c0_146] : memref<16x16x32xf32, #tpu.memory_space<vmem>>, vector<1x16x32xf32>
    %176 = vector.shape_cast %175 : vector<1x16x32xf32> to vector<16x32xf32>
    %cst_147 = arith.constant dense<0.000000e+00> : vector<4x32xf32>
    %177 = tpu.matmul %174, %176, %cst_147 {dimension_numbers = #tpu.dot_dimension_numbers<[1], [0], [0], [1], [0, 0, 1, 1], [], []>} : vector<4x16xf32>, vector<16x32xf32>, vector<4x32xf32> -> vector<4x32xf32>
    %178 = arith.addf %167, %177 : vector<4x32xf32>
    %c0_148 = arith.constant 0 : index
    %c0_149 = arith.constant 0 : index
    %179 = vector.load %arg5[%c0_148, %c0_149] : memref<1x32xf32, #tpu.memory_space<vmem>>, vector<1x32xf32>
    %180 = vector.broadcast %179 : vector<1x32xf32> to vector<4x32xf32>
    %181 = arith.addf %178, %180 : vector<4x32xf32>
    %cst_150 = arith.constant 0.000000e+00 : f32
    %182 = vector.broadcast %cst_150 : f32 to vector<4x32xf32>
    %183 = arith.maximumf %181, %182 : vector<4x32xf32>
    %cst_151 = arith.constant 0.000000e+00 : f32
    %184 = vector.broadcast %cst_151 : f32 to vector<1x256xf32>
    %185 = vector.extract_strided_slice %183 {offsets = [0, 0], sizes = [1, 32], strides = [1, 1]} : vector<4x32xf32> to vector<1x32xf32>
    %c0_152 = arith.constant 0 : index
    %c0_153 = arith.constant 0 : index
    %186 = vector.load %arg6[%c0_152, %c0_153] : memref<128x256xf32, #tpu.memory_space<vmem>>, vector<32x256xf32>
    %cst_154 = arith.constant dense<0.000000e+00> : vector<1x256xf32>
    %187 = tpu.matmul %185, %186, %cst_154 {dimension_numbers = #tpu.dot_dimension_numbers<[1], [0], [0], [1], [0, 0, 1, 1], [], []>} : vector<1x32xf32>, vector<32x256xf32>, vector<1x256xf32> -> vector<1x256xf32>
    %188 = arith.addf %184, %187 : vector<1x256xf32>
    %189 = vector.extract_strided_slice %183 {offsets = [1, 0], sizes = [1, 32], strides = [1, 1]} : vector<4x32xf32> to vector<1x32xf32>
    %c32 = arith.constant 32 : index
    %c0_155 = arith.constant 0 : index
    %190 = vector.load %arg6[%c32, %c0_155] : memref<128x256xf32, #tpu.memory_space<vmem>>, vector<32x256xf32>
    %cst_156 = arith.constant dense<0.000000e+00> : vector<1x256xf32>
    %191 = tpu.matmul %189, %190, %cst_156 {dimension_numbers = #tpu.dot_dimension_numbers<[1], [0], [0], [1], [0, 0, 1, 1], [], []>} : vector<1x32xf32>, vector<32x256xf32>, vector<1x256xf32> -> vector<1x256xf32>
    %192 = arith.addf %188, %191 : vector<1x256xf32>
    %193 = vector.extract_strided_slice %183 {offsets = [2, 0], sizes = [1, 32], strides = [1, 1]} : vector<4x32xf32> to vector<1x32xf32>
    %c64 = arith.constant 64 : index
    %c0_157 = arith.constant 0 : index
    %194 = vector.load %arg6[%c64, %c0_157] : memref<128x256xf32, #tpu.memory_space<vmem>>, vector<32x256xf32>
    %cst_158 = arith.constant dense<0.000000e+00> : vector<1x256xf32>
    %195 = tpu.matmul %193, %194, %cst_158 {dimension_numbers = #tpu.dot_dimension_numbers<[1], [0], [0], [1], [0, 0, 1, 1], [], []>} : vector<1x32xf32>, vector<32x256xf32>, vector<1x256xf32> -> vector<1x256xf32>
    %196 = arith.addf %192, %195 : vector<1x256xf32>
    %197 = vector.extract_strided_slice %183 {offsets = [3, 0], sizes = [1, 32], strides = [1, 1]} : vector<4x32xf32> to vector<1x32xf32>
    %c96 = arith.constant 96 : index
    %c0_159 = arith.constant 0 : index
    %198 = vector.load %arg6[%c96, %c0_159] : memref<128x256xf32, #tpu.memory_space<vmem>>, vector<32x256xf32>
    %cst_160 = arith.constant dense<0.000000e+00> : vector<1x256xf32>
    %199 = tpu.matmul %197, %198, %cst_160 {dimension_numbers = #tpu.dot_dimension_numbers<[1], [0], [0], [1], [0, 0, 1, 1], [], []>} : vector<1x32xf32>, vector<32x256xf32>, vector<1x256xf32> -> vector<1x256xf32>
    %200 = arith.addf %196, %199 : vector<1x256xf32>
    %c0_161 = arith.constant 0 : index
    %c0_162 = arith.constant 0 : index
    %201 = vector.load %arg7[%c0_161, %c0_162] : memref<1x256xf32, #tpu.memory_space<vmem>>, vector<1x256xf32>
    %202 = arith.addf %200, %201 : vector<1x256xf32>
    %cst_163 = arith.constant 0.000000e+00 : f32
    %203 = vector.broadcast %cst_163 : f32 to vector<1x256xf32>
    %204 = arith.maximumf %202, %203 : vector<1x256xf32>
    %c0_164 = arith.constant 0 : index
    %c0_165 = arith.constant 0 : index
    %205 = vector.load %arg8[%c0_164, %c0_165] : memref<256x6xf32, #tpu.memory_space<vmem>>, vector<256x6xf32>
    %cst_166 = arith.constant dense<0.000000e+00> : vector<1x6xf32>
    %206 = tpu.matmul %204, %205, %cst_166 {dimension_numbers = #tpu.dot_dimension_numbers<[1], [0], [0], [1], [0, 0, 1, 1], [], []>} : vector<1x256xf32>, vector<256x6xf32>, vector<1x6xf32> -> vector<1x6xf32>
    %c0_167 = arith.constant 0 : index
    %c0_168 = arith.constant 0 : index
    %207 = vector.load %arg9[%c0_167, %c0_168] : memref<1x6xf32, #tpu.memory_space<vmem>>, vector<1x6xf32>
    %208 = arith.addf %206, %207 : vector<1x6xf32>
    %c0_169 = arith.constant 0 : index
    %c0_170 = arith.constant 0 : index
    %c0_171 = arith.constant 0 : index
    %209 = vector.load %arg10[%c0_169, %c0_170, %c0_171] : memref<1x1x6xf32, #tpu.memory_space<vmem>>, vector<1x1x6xf32>
    %210 = vector.shape_cast %209 : vector<1x1x6xf32> to vector<1x6xf32>
    %211 = vector.shape_cast %208 : vector<1x6xf32> to vector<1x1x6xf32>
    tpu.vector_store %arg10[%c0_169, %c0_170, %c0_171], %211 {strides = array<i32>} : memref<1x1x6xf32, #tpu.memory_space<vmem>>, vector<1x1x6xf32>,
    return
  }
  func.func @transform_0(%arg0: i32) -> (i32, i32, i32, i32) {
    %c0_i32 = arith.constant 0 : i32
    %c0_i32_0 = arith.constant 0 : i32
    %c0_i32_1 = arith.constant 0 : i32
    %c0_i32_2 = arith.constant 0 : i32
    return %arg0, %c0_i32, %c0_i32_0, %c0_i32_1 : i32, i32, i32, i32
  }
  func.func @transform_1(%arg0: i32) -> (i32, i32) {
    %c0_i32 = arith.constant 0 : i32
    %c0_i32_0 = arith.constant 0 : i32
    %c0_i32_1 = arith.constant 0 : i32
    return %c0_i32, %c0_i32_0 : i32, i32
  }
  func.func @transform_2(%arg0: i32) -> (i32, i32) {
    %c0_i32 = arith.constant 0 : i32
    %c0_i32_0 = arith.constant 0 : i32
    %c0_i32_1 = arith.constant 0 : i32
    return %c0_i32, %c0_i32_0 : i32, i32
  }
  func.func @transform_3(%arg0: i32) -> (i32, i32, i32) {
    %c0_i32 = arith.constant 0 : i32
    %c0_i32_0 = arith.constant 0 : i32
    %c0_i32_1 = arith.constant 0 : i32
    %c0_i32_2 = arith.constant 0 : i32
    return %c0_i32, %c0_i32_0, %c0_i32_1 : i32, i32, i32
  }
  func.func @transform_4(%arg0: i32) -> (i32, i32) {
    %c0_i32 = arith.constant 0 : i32
    %c0_i32_0 = arith.constant 0 : i32
    %c0_i32_1 = arith.constant 0 : i32
    return %c0_i32, %c0_i32_0 : i32, i32
  }
  func.func @transform_5(%arg0: i32) -> (i32, i32) {
    %c0_i32 = arith.constant 0 : i32
    %c0_i32_0 = arith.constant 0 : i32
    %c0_i32_1 = arith.constant 0 : i32
    return %c0_i32, %c0_i32_0 : i32, i32
  }
  func.func @transform_6(%arg0: i32) -> (i32, i32) {
    %c0_i32 = arith.constant 0 : i32
    %c0_i32_0 = arith.constant 0 : i32
    %c0_i32_1 = arith.constant 0 : i32
    return %c0_i32, %c0_i32_0 : i32, i32
  }
  func.func @transform_7(%arg0: i32) -> (i32, i32) {
    %c0_i32 = arith.constant 0 : i32
    %c0_i32_0 = arith.constant 0 : i32
    %c0_i32_1 = arith.constant 0 : i32
    return %c0_i32, %c0_i32_0 : i32, i32
  }
  func.func @transform_8(%arg0: i32) -> (i32, i32) {
    %c0_i32 = arith.constant 0 : i32
    %c0_i32_0 = arith.constant 0 : i32
    %c0_i32_1 = arith.constant 0 : i32
    return %c0_i32, %c0_i32_0 : i32, i32
  }
  func.func @transform_9(%arg0: i32) -> (i32, i32, i32) {
    %c0_i32 = arith.constant 0 : i32
    %c0_i32_0 = arith.constant 0 : i32
    %c0_i32_1 = arith.constant 0 : i32
    return %arg0, %c0_i32, %c0_i32_0 : i32, i32, i32
  }
}

</mosaic_0001>

<bundles_post_ra>
// kernel: qnetwork_forward.1
= control target key start
LH: loop header
LB: loop body
LE: loop exit
PB: predicated region body
PF: predicated region fallthrough
CT: control target
= control target key end

     0   :  { %14 = vsyncpa [#allocation3], 0  ;;  %s3507_s0 = inlined_call_operand.vmem [shape: f32[2,16,4,256], index: 0, kind: input, shape index: {}]   ;;  %s3508_s1 = inlined_call_operand.vmem [shape: f32[256,16], index: 1, kind: input, shape index: {}]   ;;  %s3509_s2 = inlined_call_operand.vmem [shape: f32[1,16], index: 2, kind: input, shape index: {}]   ;;  %s3510_s3 = inlined_call_operand.vmem [shape: f32[16,16,32], index: 3, kind: input, shape index: {}]   ;;  %s3511_s4 = inlined_call_operand.vmem [shape: f32[1,32], index: 4, kind: input, shape index: {}]   ;;  %s3512_s5 = inlined_call_operand.vmem [shape: f32[128,256], index: 5, kind: input, shape index: {}]   ;;  %s3513_s6 = inlined_call_operand.vmem [shape: f32[1,256], index: 6, kind: input, shape index: {}]   ;;  %s3514_s7 = inlined_call_operand.vmem [shape: f32[256,6], index: 7, kind: input, shape index: {}]   ;;  %s3515_s8 = inlined_call_operand.vmem [shape: f32[1,6], index: 8, kind: input, shape index: {}]   ;;  %s3516_s9 = inlined_call_operand.hbm [shape: f32[2,1,6], index: 9, kind: output, shape index: {}]  }
   0x1   :  { %16 = vsyncpa [#allocation3 + $0x1], 0  ;;  %s2213_s30 = smov 0   ;;  %s2215_s10 = smov 0  }
   0x2   :  { %s2217_s11 = smov 0   ;;  %s2219_s12 = smov 0  }
   0x3 LB: > { %s2234_s13 = sadd.s32 4294967295, %s2161_s12   ;;  %s1947_s14 = sadd.s32 4294967294, %s2161_s12   ;;  %s2161_s12 = sphi %s2219_s12, %s3522_s12   ;;  %s2157_s11 = sphi %s2217_s11, %s3521_s11   ;;  %s2153_s10 = sphi %s2215_s10, %s3520_s10   ;;  %s2149_s30 = sphi %s2213_s30, %s3519_s30  }
   0x4   : > { %s2238_s15 = sadd.s32 1, %s2161_s12   ;;  %s223_s16 = sadd.s32 1, %s2157_s11 }
   0x5   : > { %s220_s17 = ssub.s32 %s2161_s12, %s2238_s15  ;;  %p233_p0 = scmp.ne.s32.totalorder %s2157_s11, %s2153_s10 }
   0x6   : > { %p221_p1 = scmp.eq.s32.totalorder %s220_s17, 0  ;;  %p234_p2 = scmp.eq.s32.totalorder %s2234_s13, 1 }
   0x7   : > { %p239_p3 = scmp.ne.s32.totalorder %s2153_s10, %s2149_s30  ;;  %p240_p4 = scmp.eq.s32.totalorder %s1947_s14, 1 }
   0x8   : > { %s2249_s18 = scalar_select %p221_p1, %s2157_s11, %s223_s16  }
   0x9   : > { %p2251_p5 = por %p234_p2, %p233_p0  ;;  %p2255_p6 = por %p240_p4, %p239_p3 }
   0xa   : > { %p1950_p7 = scmp.ge.s32.totalorder %s2161_s12, 1  ;;  %p290_p8 = scmp.lt.s32.totalorder %s2161_s12, 3 }
   0xc   : > { %p291_p9 = pnand %p1950_p7, %p290_p8 }
   0xd   : > { %p325_p10 = scmp.lt.s32.totalorder (!%p291_p9), %s2234_s13, 1  ;;  %s323_s17 = sand.u32 (!%p291_p9), 1, %s2153_s10  }
   0xe   : > { %294 = sbr.rel (%p291_p9) target bundleno = 2348 (0x92c), region = 56  ;;  %s1888_s25 = scalar_lea.hbm (!%p291_p9), %s3516_s9, %s2234_s13 }
   0xf   : > { %s324_s27 = scalar_lea.vmem (!%p291_p9), [#allocation2], %s323_s17  ;;  %s1880_s29 = scalar_lea.sflag (!%p291_p9), [#allocation3], %s323_s17 }
  0x10   : > { %s1890_s28 = sshll.u32 (!%p291_p9), %s324_s27, 4  ;;  %s2119_s23 = scalar_lea.hbm (!%p291_p9), %s3516_s9, 2  ;;  %s1891_s28 = int_to_ptr.vmem [resolvable:$true] %s1890_s28 }
  0x13   : > { %v2264_v0 = vld [vmem:[%s3508_s1 + $0x78] sm:$0xff]  ;;  %v2269_v1 = vld [vmem:[%s3508_s1 + $0x70] sm:$0xff]  ;;  %v2289_v4 = vld [vmem:[%s3508_s1 + $0x68] sm:$0xff]  ;;  %s326_s16 = scalar_select %p325_p10, %s2234_s13, 1  ;;  %vm468_vm0 = vcmask 130048   ;;  %vm1603_vm1 = vcmask 261120  }
  0x14   : > { %v2274_v2 = vld [vmem:[%s3508_s1 + $0xf8] sm:$0xff]  ;;  %373 = vmatpush.msra.mxu0 %v2264_v0  ;;  %424 = vmatpush.msra.mxu2 %v2264_v0  ;;  %v2282_v3 = vld [vmem:[%s3508_s1 + $0xf0] sm:$0xff]  ;;  %v2297_v5 = vld [vmem:[%s3508_s1 + $0xe8] sm:$0xff]  ;;  %vm1877_vm2 = vcmask 40960  }
  0x15   : > { %393 = vmatpush.msra.mxu1 %v2274_v2  ;;  %444 = vmatpush.msra.mxu3 %v2274_v2  ;;  %v2304_v6 = vld [vmem:[%s3508_s1 + $0x60] sm:$0xff]  ;;  %s2024_s24 = sshll.u32 %s326_s16, 7  ;;  %v2318_v8 = vld [vmem:[%s3508_s1 + $0x58] sm:$0xff]  ;;  %v2337_v10 = vld [vmem:[%s3508_s1 + $0x50] sm:$0xff] }
  0x16   : > { %374 = vmatpush.msra.mxu0 %v2269_v1  ;;  %425 = vmatpush.msra.mxu2 %v2269_v1  ;;  %v2311_v7 = vld [vmem:[%s3508_s1 + $0xe0] sm:$0xff]  ;;  %v2325_v9 = vld [vmem:[%s3508_s1 + $0xd8] sm:$0xff]  ;;  %s2330_s21 = scalar_lea.vmem %s3507_s0, %s2024_s24  ;;  %v2344_v11 = vld [vmem:[%s3508_s1 + $0xd0] sm:$0xff] }
  0x17   : > { %394 = vmatpush.msra.mxu1 %v2282_v3  ;;  %445 = vmatpush.msra.mxu3 %v2282_v3  ;;  %v2351_v12 = vld [vmem:[%s3508_s1 + $0x48] sm:$0xff]  ;;  %v363_v13 = vld [vmem:[%s2330_s21] sm:$0xff]  ;;  %v2380_v17 = vld [vmem:[%s3508_s1 + $0x38] sm:$0xff] }
  0x18   : > { %375 = vmatpush.msra.mxu0 %v2289_v4  ;;  %426 = vmatpush.msra.mxu2 %v2289_v4  ;;  %v2359_v14 = vld [vmem:[%s3508_s1 + $0xc8] sm:$0xff]  ;;  %368 = vst [vmem:[#allocation1] ss:$2 sm:$0xff] %v363_v13  ;;  %v2366_v15 = vld [vmem:[%s3508_s1 + $0x40] sm:$0xff]  ;;  %v2387_v18 = vld [vmem:[%s3508_s1 + $0xb8] sm:$0xff] }
  0x19   : > { %395 = vmatpush.msra.mxu1 %v2297_v5  ;;  %446 = vmatpush.msra.mxu3 %v2297_v5  ;;  %v2373_v16 = vld [vmem:[%s3508_s1 + $0xc0] sm:$0xff]  ;;  %v2394_v19 = vld [vmem:[%s3508_s1 + $0x30] sm:$0xff]  ;;  %v1953_v20 = vld [vmem:[%s2330_s21 + $0x8] sm:$0xff] }
  0x1a   : > { %376 = vmatpush.msra.mxu0 %v2304_v6  ;;  %427 = vmatpush.msra.mxu2 %v2304_v6  ;;  %v2402_v21 = vld [vmem:[%s3508_s1 + $0x28] sm:$0xff]  ;;  %v2407_v22 = vld [vmem:[%s3508_s1 + $0xb0] sm:$0xff]  ;;  %v2423_v26 = vld [vmem:[%s3508_s1 + $0x20] sm:$0xff] }
  0x1b   : > { %396 = vmatpush.msra.mxu1 %v2311_v7  ;;  %447 = vmatpush.msra.mxu3 %v2311_v7  ;;  %v2416_v25 = vld [vmem:[%s3508_s1 + $0xa8] sm:$0xff]  ;;  %v2430_v27 = vld [vmem:[%s3508_s1 + $0xa0] sm:$0xff]  ;;  %v2437_v28 = vld [vmem:[%s3508_s1 + $0x18] sm:$0xff] }
  0x1c   : > { %377 = vmatpush.msra.mxu0 %v2318_v8  ;;  %428 = vmatpush.msra.mxu2 %v2318_v8  ;;  %v2444_v29 = vld [vmem:[%s3508_s1 + $0x98] sm:$0xff]  ;;  %v2451_v30 = vld [vmem:[%s3508_s1 + $0x10] sm:$0xff]  ;;  %v2465_v32 = vld [vmem:[%s3508_s1 + $0x8] sm:$0xff] }
  0x1d   : > { %397 = vmatpush.msra.mxu1 %v2325_v9  ;;  %448 = vmatpush.msra.mxu3 %v2325_v9  ;;  %v2458_v31 = vld [vmem:[%s3508_s1 + $0x90] sm:$0xff]  ;;  %v2472_v33 = vld [vmem:[%s3508_s1 + $0x88] sm:$0xff]  ;;  %v2479_v34 = vld [vmem:[%s3508_s1] sm:$0xff] }
  0x1e   : > { %378 = vmatpush.msra.mxu0 %v2337_v10  ;;  %429 = vmatpush.msra.mxu2 %v2337_v10  ;;  %v2488_v36 = vld [vmem:[%s3508_s1 + $0x80] sm:$0xff]  ;;  %v415_v38 = vld [vmem:[%s3510_s3 + $0x8] sm:$0xff]  ;;  %v1955_v39 = vld [vmem:[%s3510_s3 + $0x18] sm:$0xff] }
  0x1f   : > { %398 = vmatpush.msra.mxu1 %v2344_v11  ;;  %449 = vmatpush.msra.mxu3 %v2344_v11  ;;  %v369_v23 = vld.sshfl [vmem:[#allocation1] sm:$0xff pattern:$0x75316420]  ;;  %v370_v24 = vld.sshfl [vmem:[#allocation1 + $0x8] sm:$0xff pattern:$0x75316420] }
  0x20   : > { %379 = vmatpush.msra.mxu0 %v2351_v12  ;;  %430 = vmatpush.msra.mxu2 %v2351_v12  ;;  %419 = vst [vmem:[#allocation1] ss:$2 sm:$0xff] %v1953_v20  ;;  %v414_v40 = vld [vmem:[%s3510_s3] sm:$0xff]  ;;  %v1954_v41 = vld [vmem:[%s3510_s3 + $0x10] sm:$0xff]  ;;  %v1962_v45 = vld [vmem:[%s2330_s21 + $0x18] sm:$0xff] }
  0x21   : > { %399 = vmatpush.msra.mxu1 %v2359_v14  ;;  %450 = vmatpush.msra.mxu3 %v2359_v14  ;;  %v1958_v42 = vld [vmem:[%s2330_s21 + $0x10] sm:$0xff]  ;;  %v2607_v46 = vld [vmem:[%s3509_s2] ss:$0 sm:$0xff]  ;;  %v1960_v62 = vld [vmem:[%s3510_s3 + $0x28] sm:$0xff] }
  0x22   : > { %380 = vmatpush.msra.mxu0 %v2366_v15  ;;  %431 = vmatpush.msra.mxu2 %v2366_v15  ;;  %v1966_v49 = vld [vmem:[%s2330_s21 + $0x20] sm:$0xff]  ;;  %v1964_v13 = vld [vmem:[%s3510_s3 + $0x38] sm:$0xff]  ;;  %v1963_v20 = vld [vmem:[%s3510_s3 + $0x30] sm:$0xff] }
  0x23   : > { %400 = vmatpush.msra.mxu1 %v2373_v16  ;;  %451 = vmatpush.msra.mxu3 %v2373_v16  ;;  %v1959_v63 = vld [vmem:[%s3510_s3 + $0x20] sm:$0xff] }
  0x24   : > { %381 = vmatpush.msra.mxu0 %v2380_v17  ;;  %432 = vmatpush.msra.mxu2 %v2380_v17 }
  0x25   : > { %401 = vmatpush.msra.mxu1 %v2387_v18  ;;  %452 = vmatpush.msra.mxu3 %v2387_v18 }
  0x26   : > { %382 = vmatpush.msra.mxu0 %v2394_v19  ;;  %433 = vmatpush.msra.mxu2 %v2394_v19 }
  0x27   : > { %402 = vmatpush.msra.mxu1 %v2407_v22  ;;  %453 = vmatpush.msra.mxu3 %v2407_v22  ;;  %v420_v35 = vld.sshfl [vmem:[#allocation1] sm:$0xff pattern:$0x75316420]  ;;  %v421_v37 = vld.sshfl [vmem:[#allocation1 + $0x8] sm:$0xff pattern:$0x75316420] }
  0x28   : > { %383 = vmatpush.msra.mxu0 %v2402_v21  ;;  %434 = vmatpush.msra.mxu2 %v2402_v21  ;;  %518 = vst [vmem:[#allocation1] ss:$2 sm:$0xff] %v1958_v42 }
  0x29   : > { %403 = vmatpush.msra.mxu1 %v2416_v25  ;;  %454 = vmatpush.msra.mxu3 %v2416_v25 }
  0x2a   : > { %384 = vmatpush.msra.mxu0 %v2423_v26  ;;  %435 = vmatpush.msra.mxu2 %v2423_v26 }
  0x2b   : > { %404 = vmatpush.msra.mxu1 %v2430_v27  ;;  %455 = vmatpush.msra.mxu3 %v2430_v27 }
  0x2c   : > { %385 = vmatpush.msra.mxu0 %v2437_v28  ;;  %436 = vmatpush.msra.mxu2 %v2437_v28 }
  0x2d   : > { %405 = vmatpush.msra.mxu1 %v2444_v29  ;;  %456 = vmatpush.msra.mxu3 %v2444_v29 }
  0x2e   : > { %386 = vmatpush.msra.mxu0 %v2451_v30  ;;  %437 = vmatpush.msra.mxu2 %v2451_v30 }
  0x2f   : > { %406 = vmatpush.msra.mxu1 %v2458_v31  ;;  %457 = vmatpush.msra.mxu3 %v2458_v31  ;;  %v519_v43 = vld.sshfl [vmem:[#allocation1] sm:$0xff pattern:$0x75316420]  ;;  %v520_v44 = vld.sshfl [vmem:[#allocation1 + $0x8] sm:$0xff pattern:$0x75316420] }
  0x30   : > { %387 = vmatpush.msra.mxu0 %v2465_v32  ;;  %438 = vmatpush.msra.mxu2 %v2465_v32  ;;  %594 = vst [vmem:[#allocation1] ss:$2 sm:$0xff] %v1962_v45  ;;  %v1968_v45 = vld [vmem:[%s3510_s3 + $0x48] sm:$0xff] }
  0x31   : > { %407 = vmatpush.msra.mxu1 %v2472_v33  ;;  %458 = vmatpush.msra.mxu3 %v2472_v33 }
  0x32   : > { %388 = vmatpush.msra.mxu0 %v2479_v34  ;;  %439 = vmatpush.msra.mxu2 %v2479_v34 }
  0x33   : > { %389 = vmatmul.f32.vlgmr.msra.gmra.mxu0 %v369_v23  ;;  %440 = vmatmul.f32.vlgmr.msra.gmra.mxu2 %v420_v35 }
  0x34   : > { %408 = vmatpush.msra.mxu1 %v2488_v36  ;;  %459 = vmatpush.msra.mxu3 %v2488_v36 }
  0x35   : > { %409 = vmatmul.f32.vlgmr.msra.gmra.mxu1 %v370_v24  ;;  %460 = vmatmul.f32.vlgmr.msra.gmra.mxu3 %v421_v37 }
  0x36   : > { %509 = vmatpush.msrb.mxu3 %v415_v38  ;;  %599 = vmatpush.msrb.mxu1 %v2264_v0 }
  0x37   : > { %486 = vmatpush.msrb.mxu2 %v1955_v39  ;;  %619 = vmatpush.msrb.mxu0 %v2274_v2  ;;  %v595_v47 = vld.sshfl [vmem:[#allocation1] sm:$0xff pattern:$0x75316420]  ;;  %v596_v48 = vld.sshfl [vmem:[#allocation1 + $0x8] sm:$0xff pattern:$0x75316420] }
  0x38   : > { %510 = vmatpush.msrb.mxu3 %v414_v40  ;;  %600 = vmatpush.msrb.mxu1 %v2269_v1  ;;  %670 = vst [vmem:[#allocation1] ss:$2 sm:$0xff] %v1966_v49  ;;  %v1967_v49 = vld [vmem:[%s3510_s3 + $0x40] sm:$0xff] }
  0x39   : > { %487 = vmatpush.msrb.mxu2 %v1954_v41  ;;  %620 = vmatpush.msrb.mxu0 %v2282_v3 }
  0x3a   : > { %543 = vmatpush.msra.mxu3 %v2274_v2  ;;  %601 = vmatpush.msrb.mxu1 %v2289_v4 }
  0x3b   : > { %523 = vmatpush.msra.mxu2 %v2264_v0  ;;  %621 = vmatpush.msrb.mxu0 %v2297_v5 }
  0x3c   : > { %544 = vmatpush.msra.mxu3 %v2282_v3  ;;  %602 = vmatpush.msrb.mxu1 %v2304_v6 }
  0x3d   : > { %524 = vmatpush.msra.mxu2 %v2269_v1  ;;  %622 = vmatpush.msrb.mxu0 %v2311_v7 }
  0x3e   : > { %545 = vmatpush.msra.mxu3 %v2297_v5  ;;  %603 = vmatpush.msrb.mxu1 %v2318_v8 }
  0x3f   : > { %525 = vmatpush.msra.mxu2 %v2289_v4  ;;  %623 = vmatpush.msrb.mxu0 %v2325_v9  ;;  %v672_v57 = vld.sshfl [vmem:[#allocation1 + $0x8] sm:$0xff pattern:$0x75316420]  ;;  %v671_v61 = vld.sshfl [vmem:[#allocation1] sm:$0xff pattern:$0x75316420] }
  0x40   : > { %546 = vmatpush.msra.mxu3 %v2311_v7  ;;  %604 = vmatpush.msrb.mxu1 %v2337_v10 }
  0x41   : > { %526 = vmatpush.msra.mxu2 %v2304_v6  ;;  %624 = vmatpush.msrb.mxu0 %v2344_v11 }
  0x42   : > { %547 = vmatpush.msra.mxu3 %v2325_v9  ;;  %605 = vmatpush.msrb.mxu1 %v2351_v12 }
  0x43   : > { %527 = vmatpush.msra.mxu2 %v2318_v8  ;;  %625 = vmatpush.msrb.mxu0 %v2359_v14 }
  0x44   : > { %548 = vmatpush.msra.mxu3 %v2344_v11  ;;  %606 = vmatpush.msrb.mxu1 %v2366_v15 }
  0x45   : > { %528 = vmatpush.msra.mxu2 %v2337_v10  ;;  %626 = vmatpush.msrb.mxu0 %v2373_v16 }
  0x46   : > { %549 = vmatpush.msra.mxu3 %v2359_v14  ;;  %607 = vmatpush.msrb.mxu1 %v2380_v17 }
  0x47   : > { %529 = vmatpush.msra.mxu2 %v2351_v12  ;;  %627 = vmatpush.msrb.mxu0 %v2387_v18 }
  0x48   : > { %550 = vmatpush.msra.mxu3 %v2373_v16  ;;  %608 = vmatpush.msrb.mxu1 %v2394_v19 }
  0x49   : > { %530 = vmatpush.msra.mxu2 %v2366_v15  ;;  %628 = vmatpush.msrb.mxu0 %v2407_v22 }
  0x4a   : > { %551 = vmatpush.msra.mxu3 %v2387_v18  ;;  %609 = vmatpush.msrb.mxu1 %v2402_v21 }
  0x4b   : > { %531 = vmatpush.msra.mxu2 %v2380_v17  ;;  %629 = vmatpush.msrb.mxu0 %v2416_v25 }
  0x4c   : > { %552 = vmatpush.msra.mxu3 %v2407_v22  ;;  %610 = vmatpush.msrb.mxu1 %v2423_v26 }
  0x4d   : > { %532 = vmatpush.msra.mxu2 %v2394_v19  ;;  %630 = vmatpush.msrb.mxu0 %v2430_v27 }
  0x4e   : > { %553 = vmatpush.msra.mxu3 %v2416_v25  ;;  %611 = vmatpush.msrb.mxu1 %v2437_v28 }
  0x4f   : > { %533 = vmatpush.msra.mxu2 %v2402_v21  ;;  %631 = vmatpush.msrb.mxu0 %v2444_v29 }
  0x50   : > { %554 = vmatpush.msra.mxu3 %v2430_v27  ;;  %612 = vmatpush.msrb.mxu1 %v2451_v30 }
  0x51   : > { %534 = vmatpush.msra.mxu2 %v2423_v26  ;;  %632 = vmatpush.msrb.mxu0 %v2458_v31 }
  0x52   : > { %555 = vmatpush.msra.mxu3 %v2444_v29  ;;  %613 = vmatpush.msrb.mxu1 %v2465_v32 }
  0x53   : > { %535 = vmatpush.msra.mxu2 %v2437_v28  ;;  %633 = vmatpush.msrb.mxu0 %v2472_v33 }
  0x54   : > { %556 = vmatpush.msra.mxu3 %v2458_v31  ;;  %614 = vmatpush.msrb.mxu1 %v2479_v34 }
  0x55   : > { %536 = vmatpush.msra.mxu2 %v2451_v30  ;;  %634 = vmatpush.msrb.mxu0 %v2488_v36 }
  0x56   : > { %557 = vmatpush.msra.mxu3 %v2472_v33  ;;  %695 = vmatpush.msra.mxu1 %v2274_v2 }
  0x57   : > { %537 = vmatpush.msra.mxu2 %v2465_v32  ;;  %751 = vmatpush.msra.mxu0 %v2264_v0 }
  0x58   : > { %558 = vmatpush.msra.mxu3 %v2488_v36  ;;  %696 = vmatpush.msra.mxu1 %v2282_v3 }
  0x59   : > { %538 = vmatpush.msra.mxu2 %v2479_v34  ;;  %752 = vmatpush.msra.mxu0 %v2269_v1 }
  0x5a   : > { %697 = vmatpush.msra.mxu1 %v2297_v5  ;;  %635 = vmatmul.f32.vlgmr.msrb.gmra.mxu0 %v596_v48 }
  0x5b   : > { %753 = vmatpush.msra.mxu0 %v2289_v4  ;;  %615 = vmatmul.f32.vlgmr.msrb.gmra.mxu1 %v595_v47  ;;  %v1970_v47 = vld [vmem:[%s2330_s21 + $0x28] sm:$0xff] }
  0x5c   : > { %698 = vmatpush.msra.mxu1 %v2311_v7  ;;  %746 = vst [vmem:[#allocation1] ss:$2 sm:$0xff] %v1970_v47  ;;  %v1980_v47 = vld [vmem:[%s3510_s3 + $0x78] sm:$0xff] }
  0x5d   : > { %754 = vmatpush.msra.mxu0 %v2304_v6 }
  0x5e   : > { %699 = vmatpush.msra.mxu1 %v2325_v9 }
  0x5f   : > { %755 = vmatpush.msra.mxu0 %v2318_v8 }
  0x60   : > { %700 = vmatpush.msra.mxu1 %v2344_v11 }
  0x61   : > { %756 = vmatpush.msra.mxu0 %v2337_v10 }
  0x62   : > { %701 = vmatpush.msra.mxu1 %v2359_v14 }
  0x63   : > { %757 = vmatpush.msra.mxu0 %v2351_v12 }
  0x64   : > { %702 = vmatpush.msra.mxu1 %v2373_v16 }
  0x65   : > { %758 = vmatpush.msra.mxu0 %v2366_v15 }
  0x66   : > { %703 = vmatpush.msra.mxu1 %v2387_v18 }
  0x67   : > { %759 = vmatpush.msra.mxu0 %v2380_v17 }
  0x68   : > { %704 = vmatpush.msra.mxu1 %v2407_v22 }
  0x69   : > { %760 = vmatpush.msra.mxu0 %v2394_v19 }
  0x6a   : > { %705 = vmatpush.msra.mxu1 %v2416_v25 }
  0x6b   : > { %761 = vmatpush.msra.mxu0 %v2402_v21 }
  0x6c   : > { %706 = vmatpush.msra.mxu1 %v2430_v27 }
  0x6d   : > { %762 = vmatpush.msra.mxu0 %v2423_v26 }
  0x6e   : > { %707 = vmatpush.msra.mxu1 %v2444_v29 }
  0x6f   : > { %763 = vmatpush.msra.mxu0 %v2437_v28 }
  0x70   : > { %708 = vmatpush.msra.mxu1 %v2458_v31 }
  0x71   : > { %764 = vmatpush.msra.mxu0 %v2451_v30 }
  0x72   : > { %709 = vmatpush.msra.mxu1 %v2472_v33 }
  0x73   : > { %765 = vmatpush.msra.mxu0 %v2465_v32 }
  0x74   : > { %710 = vmatpush.msra.mxu1 %v2488_v36 }
  0x75   : > { %766 = vmatpush.msra.mxu0 %v2479_v34  ;;  %711 = vmatmul.f32.vlgmr.msra.gmra.mxu1 %v672_v57  ;;  %v748_v57 = vld.sshfl [vmem:[#allocation1 + $0x8] sm:$0xff pattern:$0x75316420] }
  0x76   : > { %827 = vmatpush.msrb.mxu1 %v2264_v0 }
  0x78   : > { %828 = vmatpush.msrb.mxu1 %v2269_v1 }
  0x7a   : > { %829 = vmatpush.msrb.mxu1 %v2289_v4 }
  0x7c   : > { %830 = vmatpush.msrb.mxu1 %v2304_v6 }
  0x7e   : > { %831 = vmatpush.msrb.mxu1 %v2318_v8 }
  0x80   : > { %832 = vmatpush.msrb.mxu1 %v2337_v10 }
  0x82   : > { %833 = vmatpush.msrb.mxu1 %v2351_v12 }
  0x84   : > { %834 = vmatpush.msrb.mxu1 %v2366_v15 }
  0x86   : > { %835 = vmatpush.msrb.mxu1 %v2380_v17 }
  0x88   : > { %836 = vmatpush.msrb.mxu1 %v2394_v19 }
  0x8a   : > { %837 = vmatpush.msrb.mxu1 %v2402_v21 }
  0x8c   : > { %838 = vmatpush.msrb.mxu1 %v2423_v26 }
  0x8e   : > { %839 = vmatpush.msrb.mxu1 %v2437_v28 }
  0x90   : > { %840 = vmatpush.msrb.mxu1 %v2451_v30 }
  0x92   : > { %841 = vmatpush.msrb.mxu1 %v2465_v32 }
  0x94   : > { %842 = vmatpush.msrb.mxu1 %v2479_v34 }
  0x96   : > { %999 = vmatpush.msra.mxu1 %v2274_v2 }
  0x98   : > { %1000 = vmatpush.msra.mxu1 %v2282_v3 }
  0x9a   : > { %1001 = vmatpush.msra.mxu1 %v2297_v5 }
  0x9c   : > { %1002 = vmatpush.msra.mxu1 %v2311_v7 }
  0x9e   : > { %1003 = vmatpush.msra.mxu1 %v2325_v9 }
  0xa0   : > { %1004 = vmatpush.msra.mxu1 %v2344_v11 }
  0xa2   : > { %1005 = vmatpush.msra.mxu1 %v2359_v14 }
  0xa4   : > { %1006 = vmatpush.msra.mxu1 %v2373_v16 }
  0xa6   : > { %1007 = vmatpush.msra.mxu1 %v2387_v18 }
  0xa8   : > { %1008 = vmatpush.msra.mxu1 %v2407_v22 }
  0xaa   : > { %1009 = vmatpush.msra.mxu1 %v2416_v25 }
  0xac   : > { %1010 = vmatpush.msra.mxu1 %v2430_v27 }
  0xae   : > { %1011 = vmatpush.msra.mxu1 %v2444_v29 }
  0xb0   : > { %v390_v50 = vpop.f32.mrf.mxu0  ;;  %1012 = vmatpush.msra.mxu1 %v2458_v31 }
  0xb1   : > { %v391_v51 = vadd.f32 %v2607_v46, %v390_v50 }
  0xb2   : > { %v410_v52 = vpop.f32.mrf.mxu1  ;;  %1013 = vmatpush.msra.mxu1 %v2472_v33 }
  0xb3   : > { %v411_v53 = vadd.f32 %v410_v52, %v391_v51  ;;  %v747_v51 = vld.sshfl [vmem:[#allocation1] sm:$0xff pattern:$0x75316420] }
  0xb4   : > { %1014 = vmatpush.msra.mxu1 %v2488_v36  ;;  %767 = vmatmul.f32.vlgmr.msra.gmra.mxu0 %v747_v51 }
  0xb5   : > { %v413_v54 = vmax.f32 %v411_v53, 0.0 }
  0xb6   : > { %v441_v55 = vpop.f32.mrf.mxu2 }
  0xb7   : > { %v442_v56 = vadd.f32 %v2607_v46, %v441_v55  ;;  %1957 = vmatmul.msk.f32.vlgmr.msrb.gmra.mxu3 %vm468_vm0, %v413_v54 }
  0xb8   : > { %675 = vmatpush.msrb.mxu3 %v2264_v0  ;;  %v461_v58 = vpop.f32.mrf.mxu3 }
  0xb9   : > { %v462_v59 = vadd.f32 %v461_v58, %v442_v56  ;;  %v1972_v58 = vld [vmem:[%s3510_s3 + $0x58] sm:$0xff] }
  0xba   : > { %676 = vmatpush.msrb.mxu3 %v2269_v1 }
  0xbb   : > { %v464_v60 = vmax.f32 %v462_v59, 0.0  ;;  %v1971_v59 = vld [vmem:[%s3510_s3 + $0x50] sm:$0xff] }
  0xbc   : > { %677 = vmatpush.msrb.mxu3 %v2289_v4 }
  0xbd   : > { %1956 = vmatmul.msk.f32.vlgmr.msrb.gmra.mxu2 %vm468_vm0, %v464_v60 }
  0xbe   : > { %678 = vmatpush.msrb.mxu3 %v2304_v6  ;;  %584 = vmatpush.msrb.mxu2 %v1960_v62 }
  0xbf   : > { %559 = vmatmul.f32.vlgmr.msra.gmra.mxu3 %v520_v44 }
  0xc0   : > { %679 = vmatpush.msrb.mxu3 %v2318_v8  ;;  %585 = vmatpush.msrb.mxu2 %v1959_v63 }
  0xc2   : > { %680 = vmatpush.msrb.mxu3 %v2337_v10 }
  0xc4   : > { %681 = vmatpush.msrb.mxu3 %v2351_v12 }
  0xc5   : > { %539 = vmatmul.f32.vlgmr.msra.gmra.mxu2 %v519_v43 }
  0xc6   : > { %682 = vmatpush.msrb.mxu3 %v2366_v15  ;;  %660 = vmatpush.msra.mxu2 %v1964_v13  ;;  %v1974_v13 = vld [vmem:[%s2330_s21 + $0x30] sm:$0xff] }
  0xc7   : > { %822 = vst [vmem:[#allocation1] ss:$2 sm:$0xff] %v1974_v13  ;;  %v2887_v13 = vld [vmem:[%s3508_s1 + $0xd8] sm:$0xff] }
  0xc8   : > { %683 = vmatpush.msrb.mxu3 %v2380_v17  ;;  %661 = vmatpush.msra.mxu2 %v1963_v20 }
  0xca   : > { %684 = vmatpush.msrb.mxu3 %v2394_v19 }
  0xcc   : > { %685 = vmatpush.msrb.mxu3 %v2402_v21 }
  0xce   : > { %686 = vmatpush.msrb.mxu3 %v2423_v26 }
  0xd0   : > { %687 = vmatpush.msrb.mxu3 %v2437_v28 }
  0xd2   : > { %688 = vmatpush.msrb.mxu3 %v2451_v30 }
  0xd4   : > { %689 = vmatpush.msrb.mxu3 %v2465_v32 }
  0xd6   : > { %690 = vmatpush.msrb.mxu3 %v2479_v34 }
  0xd7   : > { %691 = vmatmul.f32.vlgmr.msrb.gmra.mxu3 %v671_v61  ;;  %v636_v43 = vpop.f32.mrf.mxu0 }
  0xd8   : > { %v616_v37 = vpop.f32.mrf.mxu1  ;;  %812 = vmatpush.msra.mxu3 %v1972_v58  ;;  %v2861_v58 = vld [vmem:[%s3508_s1 + $0xf8] sm:$0xff] }
  0xd9   : > { %v617_v42 = vadd.f32 %v2607_v46, %v616_v37  ;;  %v1975_v37 = vld [vmem:[%s3510_s3 + $0x60] sm:$0xff] }
  0xda   : > { %813 = vmatpush.msra.mxu3 %v1971_v59  ;;  %v2867_v59 = vld [vmem:[%s3508_s1 + $0xf0] sm:$0xff] }
  0xdb   : > { %v637_v48 = vadd.f32 %v636_v43, %v617_v42  ;;  %v824_v43 = vld.sshfl [vmem:[#allocation1 + $0x8] sm:$0xff pattern:$0x75316420] }
  0xdc   : > { %847 = vmatpush.msrb.mxu3 %v2274_v2 }
  0xdd   : > { %v639_v50 = vmax.f32 %v637_v48, 0.0  ;;  %v1979_v48 = vld [vmem:[%s3510_s3 + $0x70] sm:$0xff] }
  0xde   : > { %848 = vmatpush.msrb.mxu3 %v2282_v3 }
  0xe0   : > { %849 = vmatpush.msrb.mxu3 %v2297_v5 }
  0xe2   : > { %850 = vmatpush.msrb.mxu3 %v2311_v7 }
  0xe4   : > { %851 = vmatpush.msrb.mxu3 %v2325_v9 }
  0xe6   : > { %852 = vmatpush.msrb.mxu3 %v2344_v11 }
  0xe8   : > { %853 = vmatpush.msrb.mxu3 %v2359_v14 }
  0xea   : > { %854 = vmatpush.msrb.mxu3 %v2373_v16 }
  0xec   : > { %855 = vmatpush.msrb.mxu3 %v2387_v18 }
  0xee   : > { %856 = vmatpush.msrb.mxu3 %v2407_v22 }
  0xf0   : > { %857 = vmatpush.msrb.mxu3 %v2416_v25 }
  0xf2   : > { %v712_v53 = vpop.f32.mrf.mxu1  ;;  %858 = vmatpush.msrb.mxu3 %v2430_v27 }
  0xf4   : > { %859 = vmatpush.msrb.mxu3 %v2444_v29 }
  0xf6   : > { %860 = vmatpush.msrb.mxu3 %v2458_v31 }
  0xf8   : > { %861 = vmatpush.msrb.mxu3 %v2472_v33 }
  0xfa   : > { %862 = vmatpush.msrb.mxu3 %v2488_v36 }
 0x13a   : > { %v512_v23 = vpop.f32.mrf.mxu3 }
 0x140   : > { %v489_v24 = vpop.f32.mrf.mxu2 }
 0x141   : > { %v2674_v35 = vadd.f32 %v512_v23, %v489_v24  ;;  %v823_v24 = vld.sshfl [vmem:[#allocation1] sm:$0xff pattern:$0x75316420] }
 0x142   : > { %v560_v39 = vpop.f32.mrf.mxu3  ;;  %843 = vmatmul.f32.vlgmr.msrb.gmra.mxu1 %v823_v24 }
 0x143   : > { %1131 = vmatpush.msrb.mxu1 %v2264_v0 }
 0x145   : > { %1132 = vmatpush.msrb.mxu1 %v2269_v1 }
 0x147   : > { %1133 = vmatpush.msrb.mxu1 %v2289_v4 }
 0x148   : > { %v540_v38 = vpop.f32.mrf.mxu2 }
 0x149   : > { %v541_v40 = vadd.f32 %v2607_v46, %v540_v38  ;;  %1134 = vmatpush.msrb.mxu1 %v2304_v6  ;;  %v768_v38 = vpop.f32.mrf.mxu0 }
 0x14b   : > { %v561_v41 = vadd.f32 %v560_v39, %v541_v40  ;;  %1135 = vmatpush.msrb.mxu1 %v2318_v8  ;;  %v769_v39 = vadd.f32 %v2607_v46, %v768_v38  ;;  %v2960_v38 = vld [vmem:[%s3508_s1 + $0x30] sm:$0xff] }
 0x14d   : > { %v563_v44 = vmax.f32 %v561_v41, 0.0  ;;  %1136 = vmatpush.msrb.mxu1 %v2337_v10 }
 0x14f   : > { %1961 = vmatmul.msk.f32.vlgmr.msrb.gmra.mxu2 %vm468_vm0, %v563_v44  ;;  %1137 = vmatpush.msrb.mxu1 %v2351_v12  ;;  %v1978_v44 = vld [vmem:[%s2330_s21 + $0x38] sm:$0xff] }
 0x150   : > { %736 = vmatpush.msrb.mxu2 %v1968_v45  ;;  %898 = vst [vmem:[#allocation1] ss:$2 sm:$0xff] %v1978_v44 }
 0x151   : > { %1138 = vmatpush.msrb.mxu1 %v2366_v15 }
 0x152   : > { %737 = vmatpush.msrb.mxu2 %v1967_v49 }
 0x153   : > { %1139 = vmatpush.msrb.mxu1 %v2380_v17 }
 0x155   : > { %1140 = vmatpush.msrb.mxu1 %v2394_v19 }
 0x157   : > { %1965 = vmatmul.msk.f32.vlgmr.msra.gmra.mxu2 %vm468_vm0, %v639_v50  ;;  %1141 = vmatpush.msrb.mxu1 %v2402_v21  ;;  %v899_v45 = vld.sshfl [vmem:[#allocation1] sm:$0xff pattern:$0x75316420] }
 0x158   : > { %771 = vmatpush.msra.mxu2 %v2274_v2 }
 0x159   : > { %1142 = vmatpush.msrb.mxu1 %v2423_v26 }
 0x15a   : > { %v692_v52 = vpop.f32.mrf.mxu3  ;;  %772 = vmatpush.msra.mxu2 %v2282_v3 }
 0x15b   : > { %v693_v54 = vadd.f32 %v2607_v46, %v692_v52  ;;  %1143 = vmatpush.msrb.mxu1 %v2437_v28 }
 0x15c   : > { %773 = vmatpush.msra.mxu2 %v2297_v5 }
 0x15d   : > { %v713_v55 = vadd.f32 %v712_v53, %v693_v54  ;;  %1144 = vmatpush.msrb.mxu1 %v2451_v30 }
 0x15e   : > { %774 = vmatpush.msra.mxu2 %v2311_v7 }
 0x15f   : > { %v715_v56 = vmax.f32 %v713_v55, 0.0  ;;  %1145 = vmatpush.msrb.mxu1 %v2465_v32 }
 0x160   : > { %775 = vmatpush.msra.mxu2 %v2325_v9 }
 0x161   : > { %1969 = vmatmul.msk.f32.vlgmr.msrb.gmra.mxu2 %vm468_vm0, %v715_v56  ;;  %1146 = vmatpush.msrb.mxu1 %v2479_v34  ;;  %v900_v56 = vld.sshfl [vmem:[#allocation1 + $0x8] sm:$0xff pattern:$0x75316420] }
 0x162   : > { %776 = vmatpush.msra.mxu2 %v2344_v11 }
 0x164   : > { %777 = vmatpush.msra.mxu2 %v2359_v14 }
 0x166   : > { %778 = vmatpush.msra.mxu2 %v2373_v16 }
 0x168   : > { %779 = vmatpush.msra.mxu2 %v2387_v18 }
 0x16a   : > { %780 = vmatpush.msra.mxu2 %v2407_v22 }
 0x16c   : > { %781 = vmatpush.msra.mxu2 %v2416_v25 }
 0x16e   : > { %782 = vmatpush.msra.mxu2 %v2430_v27 }
 0x170   : > { %783 = vmatpush.msra.mxu2 %v2444_v29 }
 0x172   : > { %784 = vmatpush.msra.mxu2 %v2458_v31 }
 0x174   : > { %785 = vmatpush.msra.mxu2 %v2472_v33 }
 0x176   : > { %786 = vmatpush.msra.mxu2 %v2488_v36 }
 0x177   : > { %787 = vmatmul.f32.vlgmr.msra.gmra.mxu2 %v748_v57  ;;  %v1987_v57 = vld [vmem:[%s3510_s3 + $0x90] sm:$0xff] }
 0x178   : > { %903 = vmatpush.msrb.mxu2 %v2264_v0 }
 0x17a   : > { %904 = vmatpush.msrb.mxu2 %v2269_v1 }
 0x17c   : > { %905 = vmatpush.msrb.mxu2 %v2289_v4 }
 0x17e   : > { %906 = vmatpush.msrb.mxu2 %v2304_v6 }
 0x180   : > { %907 = vmatpush.msrb.mxu2 %v2318_v8 }
 0x182   : > { %908 = vmatpush.msrb.mxu2 %v2337_v10 }
 0x184   : > { %909 = vmatpush.msrb.mxu2 %v2351_v12 }
 0x186   : > { %910 = vmatpush.msrb.mxu2 %v2366_v15 }
 0x188   : > { %911 = vmatpush.msrb.mxu2 %v2380_v17 }
 0x18a   : > { %912 = vmatpush.msrb.mxu2 %v2394_v19 }
 0x18c   : > { %913 = vmatpush.msrb.mxu2 %v2402_v21 }
 0x18e   : > { %914 = vmatpush.msrb.mxu2 %v2423_v26 }
 0x190   : > { %915 = vmatpush.msrb.mxu2 %v2437_v28 }
 0x192   : > { %916 = vmatpush.msrb.mxu2 %v2451_v30 }
 0x194   : > { %917 = vmatpush.msrb.mxu2 %v2465_v32 }
 0x196   : > { %918 = vmatpush.msrb.mxu2 %v2479_v34 }
 0x197   : > { %919 = vmatmul.f32.vlgmr.msrb.gmra.mxu2 %v899_v45 }
 0x1bf   : > { %v844_v51 = vpop.f32.mrf.mxu1 }
 0x1c0   : > { %v845_v52 = vadd.f32 %v2607_v46, %v844_v51  ;;  %v3026_v51 = vld [vmem:[%s3508_s1 + $0xa0] sm:$0xff] }
 0x1d2   : > { %v587_v60 = vpop.f32.mrf.mxu2 }
 0x1d3   : > { %v590_v61 = vadd.f32 %v587_v60, %v2674_v35  ;;  %v1976_v35 = vld [vmem:[%s3510_s3 + $0x68] sm:$0xff] }
 0x1d4   : > { %888 = vmatpush.msrb.mxu0 %v1976_v35  ;;  %v2873_v60 = vld [vmem:[%s3508_s1 + $0xe8] sm:$0xff] }
 0x1d6   : > { %889 = vmatpush.msrb.mxu0 %v1975_v37 }
 0x1d8   : > { %923 = vmatpush.msra.mxu0 %v2274_v2 }
 0x1da   : > { %v663_v62 = vpop.f32.mrf.mxu2  ;;  %924 = vmatpush.msra.mxu0 %v2282_v3 }
 0x1db   : > { %v666_v63 = vadd.f32 %v663_v62, %v590_v61 }
 0x1dc   : > { %925 = vmatpush.msra.mxu0 %v2297_v5 }
 0x1de   : > { %926 = vmatpush.msra.mxu0 %v2311_v7 }
 0x1e0   : > { %927 = vmatpush.msra.mxu0 %v2325_v9 }
 0x1e2   : > { %928 = vmatpush.msra.mxu0 %v2344_v11 }
 0x1e4   : > { %v739_v20 = vpop.f32.mrf.mxu2  ;;  %929 = vmatpush.msra.mxu0 %v2359_v14 }
 0x1e5   : > { %v742_v23 = vadd.f32 %v739_v20, %v666_v63  ;;  %v2881_v63 = vld [vmem:[%s3508_s1 + $0xe0] sm:$0xff] }
 0x1e6   : > { %930 = vmatpush.msra.mxu0 %v2373_v16 }
 0x1e8   : > { %931 = vmatpush.msra.mxu0 %v2387_v18 }
 0x1ea   : > { %932 = vmatpush.msra.mxu0 %v2407_v22 }
 0x1ec   : > { %933 = vmatpush.msra.mxu0 %v2416_v25 }
 0x1ee   : > { %934 = vmatpush.msra.mxu0 %v2430_v27 }
 0x1f0   : > { %935 = vmatpush.msra.mxu0 %v2444_v29 }
 0x1f2   : > { %936 = vmatpush.msra.mxu0 %v2458_v31 }
 0x1f4   : > { %937 = vmatpush.msra.mxu0 %v2472_v33 }
 0x1f6   : > { %938 = vmatpush.msra.mxu0 %v2488_v36 }
 0x1fa   : > { %v788_v40 = vpop.f32.mrf.mxu2 }
 0x1fb   : > { %v789_v41 = vadd.f32 %v788_v40, %v769_v39  ;;  %v1990_v39 = vld [vmem:[%s2330_s21 + $0x50] sm:$0xff] }
 0x1fd   : > { %v791_v42 = vmax.f32 %v789_v41, 0.0  ;;  %v1992_v41 = vld [vmem:[%s3510_s3 + $0xa8] sm:$0xff] }
 0x1ff   : > { %1973 = vmatmul.msk.f32.vlgmr.msra.gmra.mxu3 %vm468_vm0, %v791_v42  ;;  %v2994_v42 = vld [vmem:[%s3508_s1 + $0xc8] sm:$0xff] }
 0x200   : > { %964 = vmatpush.msra.mxu3 %v1980_v47  ;;  %v3006_v47 = vld [vmem:[%s3508_s1 + $0xb8] sm:$0xff] }
 0x202   : > { %965 = vmatpush.msra.mxu3 %v1979_v48 }
 0x207   : > { %863 = vmatmul.f32.vlgmr.msrb.gmra.mxu3 %v824_v43  ;;  %v3000_v43 = vld [vmem:[%s3508_s1 + $0xc0] sm:$0xff] }
 0x208   : > { %979 = vmatpush.msrb.mxu3 %v2264_v0 }
 0x20a   : > { %980 = vmatpush.msrb.mxu3 %v2269_v1 }
 0x20c   : > { %981 = vmatpush.msrb.mxu3 %v2289_v4 }
 0x20e   : > { %982 = vmatpush.msrb.mxu3 %v2304_v6 }
 0x210   : > { %983 = vmatpush.msrb.mxu3 %v2318_v8 }
 0x212   : > { %984 = vmatpush.msrb.mxu3 %v2337_v10 }
 0x214   : > { %985 = vmatpush.msrb.mxu3 %v2351_v12 }
 0x216   : > { %986 = vmatpush.msrb.mxu3 %v2366_v15 }
 0x218   : > { %987 = vmatpush.msrb.mxu3 %v2380_v17 }
 0x21a   : > { %988 = vmatpush.msrb.mxu3 %v2394_v19 }
 0x21c   : > { %989 = vmatpush.msrb.mxu3 %v2402_v21 }
 0x21e   : > { %990 = vmatpush.msrb.mxu3 %v2423_v26 }
 0x220   : > { %991 = vmatpush.msrb.mxu3 %v2437_v28 }
 0x222   : > { %992 = vmatpush.msrb.mxu3 %v2451_v30 }
 0x224   : > { %993 = vmatpush.msrb.mxu3 %v2465_v32 }
 0x226   : > { %994 = vmatpush.msrb.mxu3 %v2479_v34 }
 0x282   : > { %v815_v49 = vpop.f32.mrf.mxu3 }
 0x283   : > { %v818_v50 = vadd.f32 %v815_v49, %v742_v23  ;;  %v3012_v49 = vld [vmem:[%s3508_s1 + $0xb0] sm:$0xff] }
 0x28a   : > { %v864_v53 = vpop.f32.mrf.mxu3 }
 0x28b   : > { %v865_v54 = vadd.f32 %v864_v53, %v845_v52  ;;  %v3033_v52 = vld [vmem:[%s3508_s1 + $0x98] sm:$0xff] }
 0x28d   : > { %v867_v55 = vmax.f32 %v865_v54, 0.0  ;;  %v3040_v54 = vld [vmem:[%s3508_s1 + $0x90] sm:$0xff] }
 0x28f   : > { %1977 = vmatmul.msk.f32.vlgmr.msrb.gmra.mxu0 %vm468_vm0, %v867_v55  ;;  %v3047_v55 = vld [vmem:[%s3508_s1 + $0x88] sm:$0xff] }
 0x290   : > { %1055 = vmatpush.msrb.mxu0 %v2264_v0  ;;  %v1982_v0 = vld [vmem:[%s2330_s21 + $0x40] sm:$0xff] }
 0x291   : > { %974 = vst [vmem:[#allocation1] ss:$2 sm:$0xff] %v1982_v0  ;;  %v3072_v0 = vld [vmem:[%s3508_s1 + $0x18] sm:$0xff] }
 0x292   : > { %1056 = vmatpush.msrb.mxu0 %v2269_v1 }
 0x294   : > { %1057 = vmatpush.msrb.mxu0 %v2289_v4  ;;  %v1984_v4 = vld [vmem:[%s3510_s3 + $0x88] sm:$0xff] }
 0x295   : > { %1040 = vmatpush.msra.mxu2 %v1984_v4  ;;  %v3084_v4 = vld [vmem:[%s3508_s1 + $0x8] sm:$0xff] }
 0x296   : > { %1058 = vmatpush.msrb.mxu0 %v2304_v6  ;;  %v1983_v6 = vld [vmem:[%s3510_s3 + $0x80] sm:$0xff] }
 0x297   : > { %939 = vmatmul.f32.vlgmr.msra.gmra.mxu0 %v900_v56  ;;  %1041 = vmatpush.msra.mxu2 %v1983_v6  ;;  %v3060_v56 = vld [vmem:[%s3508_s1 + $0x28] sm:$0xff]  ;;  %v3090_v6 = vld [vmem:[%s3508_s1] sm:$0xff] }
 0x298   : > { %1059 = vmatpush.msrb.mxu0 %v2318_v8  ;;  %v976_v1 = vld.sshfl [vmem:[#allocation1 + $0x8] sm:$0xff pattern:$0x75316420] }
 0x299   : > { %1015 = vmatmul.f32.vlgmr.msra.gmra.mxu1 %v976_v1  ;;  %1075 = vmatpush.msrb.mxu2 %v2274_v2  ;;  %v3078_v1 = vld [vmem:[%s3508_s1 + $0x10] sm:$0xff] }
 0x29a   : > { %1060 = vmatpush.msrb.mxu0 %v2337_v10 }
 0x29b   : > { %1076 = vmatpush.msrb.mxu2 %v2282_v3 }
 0x29c   : > { %1061 = vmatpush.msrb.mxu0 %v2351_v12  ;;  %v920_v12 = vpop.f32.mrf.mxu2 }
 0x29d   : > { %1077 = vmatpush.msrb.mxu2 %v2297_v5 }
 0x29e   : > { %1062 = vmatpush.msrb.mxu0 %v2366_v15  ;;  %v921_v15 = vadd.f32 %v2607_v46, %v920_v12  ;;  %v1996_v12 = vld [vmem:[%s3510_s3 + $0xb8] sm:$0xff] }
 0x29f   : > { %1078 = vmatpush.msrb.mxu2 %v2311_v7  ;;  %v975_v7 = vld.sshfl [vmem:[#allocation1] sm:$0xff pattern:$0x75316420]  ;;  %1268 = vmatpush.msra.mxu1 %v1996_v12 }
 0x2a0   : > { %1063 = vmatpush.msrb.mxu0 %v2380_v17 }
 0x2a1   : > { %1079 = vmatpush.msrb.mxu2 %v2325_v9  ;;  %v1986_v9 = vld [vmem:[%s2330_s21 + $0x48] sm:$0xff] }
 0x2a2   : > { %1064 = vmatpush.msrb.mxu0 %v2394_v19  ;;  %1050 = vst [vmem:[#allocation1] ss:$2 sm:$0xff] %v1986_v9  ;;  %v1988_v19 = vld [vmem:[%s3510_s3 + $0x98] sm:$0xff] }
 0x2a3   : > { %1080 = vmatpush.msrb.mxu2 %v2344_v11 }
 0x2a4   : > { %1065 = vmatpush.msrb.mxu0 %v2402_v21 }
 0x2a5   : > { %1081 = vmatpush.msrb.mxu2 %v2359_v14 }
 0x2a6   : > { %1066 = vmatpush.msrb.mxu0 %v2423_v26 }
 0x2a7   : > { %1082 = vmatpush.msrb.mxu2 %v2373_v16 }
 0x2a8   : > { %1067 = vmatpush.msrb.mxu0 %v2437_v28 }
 0x2a9   : > { %1083 = vmatpush.msrb.mxu2 %v2387_v18  ;;  %v1051_v17 = vld.sshfl [vmem:[#allocation1] sm:$0xff pattern:$0x75316420] }
 0x2aa   : > { %1068 = vmatpush.msrb.mxu0 %v2451_v30 }
 0x2ab   : > { %1084 = vmatpush.msrb.mxu2 %v2407_v22 }
 0x2ac   : > { %1069 = vmatpush.msrb.mxu0 %v2465_v32 }
 0x2ad   : > { %1085 = vmatpush.msrb.mxu2 %v2416_v25 }
 0x2ae   : > { %1070 = vmatpush.msrb.mxu0 %v2479_v34 }
 0x2af   : > { %1086 = vmatpush.msrb.mxu2 %v2430_v27  ;;  %1071 = vmatmul.f32.vlgmr.msrb.gmra.mxu0 %v1051_v17 }
 0x2b0   : > { %1192 = vmatpush.msra.mxu0 %v1992_v41 }
 0x2b1   : > { %1087 = vmatpush.msrb.mxu2 %v2444_v29 }
 0x2b3   : > { %1088 = vmatpush.msrb.mxu2 %v2458_v31 }
 0x2b5   : > { %1089 = vmatpush.msrb.mxu2 %v2472_v33 }
 0x2b7   : > { %1090 = vmatpush.msrb.mxu2 %v2488_v36 }
 0x30c   : > { %v891_v8 = vpop.f32.mrf.mxu0 }
 0x30d   : > { %v894_v10 = vadd.f32 %v891_v8, %v818_v50  ;;  %v3019_v50 = vld [vmem:[%s3508_s1 + $0xa8] sm:$0xff]  ;;  %v1994_v8 = vld [vmem:[%s2330_s21 + $0x58] sm:$0xff] }
 0x314   : > { %v940_v2 = vpop.f32.mrf.mxu0 }
 0x315   : > { %v941_v3 = vadd.f32 %v940_v2, %v921_v15  ;;  %v1995_v15 = vld [vmem:[%s3510_s3 + $0xb0] sm:$0xff] }
 0x316   : > { %v1016_v23 = vpop.f32.mrf.mxu1  ;;  %1269 = vmatpush.msra.mxu1 %v1995_v15 }
 0x317   : > { %v943_v5 = vmax.f32 %v941_v3, 0.0 }
 0x319   : > { %1981 = vmatmul.msk.f32.vlgmr.msra.gmra.mxu3 %vm468_vm0, %v943_v5 }
 0x31a   : > { %1116 = vmatpush.msra.mxu3 %v1988_v19 }
 0x31c   : > { %1117 = vmatpush.msra.mxu3 %v1987_v57 }
 0x321   : > { %995 = vmatmul.f32.vlgmr.msrb.gmra.mxu3 %v975_v7 }
 0x322   : > { %1151 = vmatpush.msrb.mxu3 %v2861_v58 }
 0x324   : > { %1152 = vmatpush.msrb.mxu3 %v2867_v59 }
 0x326   : > { %1153 = vmatpush.msrb.mxu3 %v2873_v60 }
 0x328   : > { %1154 = vmatpush.msrb.mxu3 %v2881_v63 }
 0x32a   : > { %1155 = vmatpush.msrb.mxu3 %v2887_v13 }
 0x32c   : > { %1156 = vmatpush.msrb.mxu3 %v2344_v11  ;;  %v2901_v11 = vld [vmem:[%s3508_s1 + $0x78] sm:$0xff] }
 0x32e   : > { %1157 = vmatpush.msrb.mxu3 %v2359_v14  ;;  %v2908_v14 = vld [vmem:[%s3508_s1 + $0x70] sm:$0xff] }
 0x330   : > { %1158 = vmatpush.msrb.mxu3 %v2373_v16  ;;  %v1052_v16 = vld.sshfl [vmem:[#allocation1 + $0x8] sm:$0xff pattern:$0x75316420] }
 0x331   : > { %1126 = vst [vmem:[#allocation1] ss:$2 sm:$0xff] %v1990_v39 }
 0x332   : > { %1159 = vmatpush.msrb.mxu3 %v2387_v18  ;;  %v2915_v18 = vld [vmem:[%s3508_s1 + $0x68] sm:$0xff] }
 0x334   : > { %1160 = vmatpush.msrb.mxu3 %v2407_v22  ;;  %v2922_v22 = vld [vmem:[%s3508_s1 + $0x60] sm:$0xff] }
 0x336   : > { %1161 = vmatpush.msrb.mxu3 %v2416_v25  ;;  %v2929_v25 = vld [vmem:[%s3508_s1 + $0x58] sm:$0xff] }
 0x338   : > { %1162 = vmatpush.msrb.mxu3 %v2430_v27  ;;  %v2936_v27 = vld [vmem:[%s3508_s1 + $0x50] sm:$0xff]  ;;  %v1127_v40 = vld.sshfl [vmem:[#allocation1] sm:$0xff pattern:$0x75316420] }
 0x339   : > { %1147 = vmatmul.f32.vlgmr.msrb.gmra.mxu1 %v1127_v40  ;;  %v1128_v53 = vld.sshfl [vmem:[#allocation1 + $0x8] sm:$0xff pattern:$0x75316420] }
 0x33a   : > { %1163 = vmatpush.msrb.mxu3 %v2444_v29  ;;  %v2942_v29 = vld [vmem:[%s3508_s1 + $0x48] sm:$0xff]  ;;  %1202 = vst [vmem:[#allocation1] ss:$2 sm:$0xff] %v1994_v8  ;;  %1303 = vmatpush.msrb.mxu1 %v2861_v58 }
 0x33c   : > { %1164 = vmatpush.msrb.mxu3 %v2458_v31  ;;  %v2948_v31 = vld [vmem:[%s3508_s1 + $0x40] sm:$0xff]  ;;  %1304 = vmatpush.msrb.mxu1 %v2867_v59 }
 0x33e   : > { %1165 = vmatpush.msrb.mxu3 %v2472_v33  ;;  %v2954_v33 = vld [vmem:[%s3508_s1 + $0x38] sm:$0xff]  ;;  %1305 = vmatpush.msrb.mxu1 %v2873_v60 }
 0x340   : > { %1166 = vmatpush.msrb.mxu3 %v2488_v36  ;;  %1306 = vmatpush.msrb.mxu1 %v2881_v63 }
 0x341   : > { %v1204_v57 = vld.sshfl [vmem:[#allocation1 + $0x8] sm:$0xff pattern:$0x75316420] }
 0x342   : > { %1307 = vmatpush.msrb.mxu1 %v2887_v13 }
 0x39c   : > { %v967_v61 = vpop.f32.mrf.mxu3 }
 0x39d   : > { %v2876_v62 = vadd.f32 %v967_v61, %v894_v10  ;;  %v1203_v10 = vld.sshfl [vmem:[#allocation1] sm:$0xff pattern:$0x75316420] }
 0x39e   : > { %v3126_v61 = vld [vmem:[%s3508_s1 + $0x80] sm:$0xff] }
 0x3a4   : > { %v996_v20 = vpop.f32.mrf.mxu3 }
 0x3a5   : > { %v997_v24 = vadd.f32 %v2607_v46, %v996_v20  ;;  %v2002_v20 = vld [vmem:[%s2330_s21 + $0x68] sm:$0xff] }
 0x3a7   : > { %v1017_v35 = vadd.f32 %v1016_v23, %v997_v24 }
 0x3a9   : > { %v1019_v37 = vmax.f32 %v1017_v35, 0.0  ;;  %v2000_v35 = vld [vmem:[%s3510_s3 + $0xc8] sm:$0xff] }
 0x3ab   : > { %1985 = vmatmul.msk.f32.vlgmr.msra.gmra.mxu2 %vm468_vm0, %v1019_v37  ;;  %v1999_v37 = vld [vmem:[%s3510_s3 + $0xc0] sm:$0xff] }
 0x3ac   : > { %1207 = vmatpush.msra.mxu2 %v2901_v11 }
 0x3ae   : > { %1208 = vmatpush.msra.mxu2 %v2908_v14 }
 0x3b0   : > { %1209 = vmatpush.msra.mxu2 %v2915_v18 }
 0x3b2   : > { %1210 = vmatpush.msra.mxu2 %v2922_v22 }
 0x3b3   : > { %1091 = vmatmul.f32.vlgmr.msrb.gmra.mxu2 %v1052_v16 }
 0x3b4   : > { %1211 = vmatpush.msra.mxu2 %v2929_v25 }
 0x3b6   : > { %1212 = vmatpush.msra.mxu2 %v2936_v27  ;;  %v1148_v5 = vpop.f32.mrf.mxu1 }
 0x3b7   : > { %v1149_v7 = vadd.f32 %v2607_v46, %v1148_v5  ;;  %v1599_v5 = vld [vmem:[%s3512_s5 + $0x70] sm:$0xff] }
 0x3b8   : > { %1213 = vmatpush.msra.mxu2 %v2942_v29 }
 0x3ba   : > { %1214 = vmatpush.msra.mxu2 %v2948_v31 }
 0x3bc   : > { %1215 = vmatpush.msra.mxu2 %v2954_v33 }
 0x3be   : > { %1216 = vmatpush.msra.mxu2 %v2960_v38 }
 0x3c0   : > { %1217 = vmatpush.msra.mxu2 %v2402_v21  ;;  %v1991_v21 = vld [vmem:[%s3510_s3 + $0xa0] sm:$0xff] }
 0x3c1   : > { %1193 = vmatpush.msra.mxu0 %v1991_v21 }
 0x3c2   : > { %1218 = vmatpush.msra.mxu2 %v2423_v26 }
 0x3c3   : > { %1227 = vmatpush.msrb.mxu0 %v2861_v58 }
 0x3c4   : > { %1219 = vmatpush.msra.mxu2 %v2437_v28 }
 0x3c5   : > { %1228 = vmatpush.msrb.mxu0 %v2867_v59 }
 0x3c6   : > { %1220 = vmatpush.msra.mxu2 %v2451_v30  ;;  %v1072_v30 = vpop.f32.mrf.mxu0 }
 0x3c7   : > { %1229 = vmatpush.msrb.mxu0 %v2873_v60 }
 0x3c8   : > { %1221 = vmatpush.msra.mxu2 %v2465_v32  ;;  %v2987_v32 = vld [vmem:[%s3508_s1 + $0xd0] sm:$0xff] }
 0x3c9   : > { %1230 = vmatpush.msrb.mxu0 %v2881_v63  ;;  %1308 = vmatpush.msrb.mxu1 %v2987_v32 }
 0x3ca   : > { %1222 = vmatpush.msra.mxu2 %v2479_v34  ;;  %v1073_v34 = vadd.f32 %v2607_v46, %v1072_v30 }
 0x3cb   : > { %1231 = vmatpush.msrb.mxu0 %v2887_v13  ;;  %1223 = vmatmul.f32.vlgmr.msra.gmra.mxu2 %v1203_v10  ;;  %v3198_v10 = vld [vmem:[%s3509_s2] ss:$0 sm:$0xff] }
 0x3cc   : > { %1309 = vmatpush.msrb.mxu1 %v2994_v42  ;;  %1344 = vmatpush.msrb.mxu2 %v2000_v35  ;;  %v1690_v35 = vld [vmem:[%s3512_s5 + $0x90] sm:$0xff] }
 0x3cd   : > { %1232 = vmatpush.msrb.mxu0 %v2987_v32 }
 0x3ce   : > { %1310 = vmatpush.msrb.mxu1 %v3000_v43  ;;  %1345 = vmatpush.msrb.mxu2 %v1999_v37  ;;  %v1593_v37 = vld [vmem:[%s3512_s5 + $0x40] sm:$0xff] }
 0x3cf   : > { %1233 = vmatpush.msrb.mxu0 %v2994_v42 }
 0x3d0   : > { %1311 = vmatpush.msrb.mxu1 %v3006_v47  ;;  %1379 = vmatpush.msra.mxu2 %v2861_v58 }
 0x3d1   : > { %1234 = vmatpush.msrb.mxu0 %v3000_v43 }
 0x3d2   : > { %1312 = vmatpush.msrb.mxu1 %v3012_v49  ;;  %1380 = vmatpush.msra.mxu2 %v2867_v59 }
 0x3d3   : > { %1235 = vmatpush.msrb.mxu0 %v3006_v47 }
 0x3d4   : > { %1313 = vmatpush.msrb.mxu1 %v3019_v50  ;;  %1381 = vmatpush.msra.mxu2 %v2873_v60 }
 0x3d5   : > { %1236 = vmatpush.msrb.mxu0 %v3012_v49 }
 0x3d6   : > { %1314 = vmatpush.msrb.mxu1 %v3026_v51  ;;  %1382 = vmatpush.msra.mxu2 %v2881_v63 }
 0x3d7   : > { %1237 = vmatpush.msrb.mxu0 %v3019_v50 }
 0x3d8   : > { %1315 = vmatpush.msrb.mxu1 %v3033_v52  ;;  %1383 = vmatpush.msra.mxu2 %v2887_v13 }
 0x3d9   : > { %1238 = vmatpush.msrb.mxu0 %v3026_v51 }
 0x3da   : > { %1316 = vmatpush.msrb.mxu1 %v3040_v54  ;;  %1384 = vmatpush.msra.mxu2 %v2987_v32 }
 0x3db   : > { %1239 = vmatpush.msrb.mxu0 %v3033_v52 }
 0x3dc   : > { %1317 = vmatpush.msrb.mxu1 %v3047_v55  ;;  %1385 = vmatpush.msra.mxu2 %v2994_v42 }
 0x3dd   : > { %1240 = vmatpush.msrb.mxu0 %v3040_v54 }
 0x3de   : > { %1318 = vmatpush.msrb.mxu1 %v3126_v61  ;;  %1386 = vmatpush.msra.mxu2 %v3000_v43 }
 0x3df   : > { %1241 = vmatpush.msrb.mxu0 %v3047_v55 }
 0x3e0   : > { %1387 = vmatpush.msra.mxu2 %v3006_v47 }
 0x3e1   : > { %1242 = vmatpush.msrb.mxu0 %v2488_v36  ;;  %v3066_v36 = vld [vmem:[%s3508_s1 + $0x20] sm:$0xff] }
 0x3e2   : > { %1388 = vmatpush.msra.mxu2 %v3012_v49 }
 0x3e4   : > { %1389 = vmatpush.msra.mxu2 %v3019_v50 }
 0x3e6   : > { %1390 = vmatpush.msra.mxu2 %v3026_v51 }
 0x3e8   : > { %1391 = vmatpush.msra.mxu2 %v3033_v52 }
 0x3ea   : > { %1392 = vmatpush.msra.mxu2 %v3040_v54 }
 0x3ec   : > { %1393 = vmatpush.msra.mxu2 %v3047_v55 }
 0x3ee   : > { %1394 = vmatpush.msra.mxu2 %v3126_v61 }
 0x42e   : > { %v1043_v26 = vpop.f32.mrf.mxu2 }
 0x42f   : > { %v2981_v28 = vadd.f32 %v1043_v26, %v2876_v62  ;;  %v1998_v62 = vld [vmem:[%s2330_s21 + $0x60] sm:$0xff] }
 0x430   : > { %1278 = vst [vmem:[#allocation1] ss:$2 sm:$0xff] %v1998_v62  ;;  %v1692_v62 = vld [vmem:[%s3512_s5 + $0xa0] sm:$0xff] }
 0x436   : > { %v1092_v44 = vpop.f32.mrf.mxu2 }
 0x437   : > { %v1093_v45 = vadd.f32 %v1092_v44, %v1073_v34  ;;  %v1279_v23 = vld.sshfl [vmem:[#allocation1] sm:$0xff pattern:$0x75316420]  ;;  %v1280_v24 = vld.sshfl [vmem:[#allocation1 + $0x8] sm:$0xff pattern:$0x75316420] }
 0x438   : > { %1354 = vst [vmem:[#allocation1] ss:$2 sm:$0xff] %v2002_v20  ;;  %v2004_v44 = vld [vmem:[%s3510_s3 + $0xd8] sm:$0xff]  ;;  %v1595_v20 = vld [vmem:[%s3512_s5 + $0x50] sm:$0xff] }
 0x439   : > { %v1095_v48 = vmax.f32 %v1093_v45, 0.0  ;;  %v2003_v45 = vld [vmem:[%s3510_s3 + $0xd0] sm:$0xff] }
 0x43b   : > { %1989 = vmatmul.msk.f32.vlgmr.msra.gmra.mxu3 %vm468_vm0, %v1095_v48 }
 0x43c   : > { %1283 = vmatpush.msra.mxu3 %v2901_v11 }
 0x43e   : > { %1284 = vmatpush.msra.mxu3 %v2908_v14 }
 0x43f   : > { %v1356_v30 = vld.sshfl [vmem:[#allocation1 + $0x8] sm:$0xff pattern:$0x75316420]  ;;  %v1355_v34 = vld.sshfl [vmem:[#allocation1] sm:$0xff pattern:$0x75316420] }
 0x440   : > { %1285 = vmatpush.msra.mxu3 %v2915_v18 }
 0x442   : > { %1286 = vmatpush.msra.mxu3 %v2922_v22 }
 0x443   : > { %1167 = vmatmul.f32.vlgmr.msrb.gmra.mxu3 %v1128_v53 }
 0x444   : > { %1287 = vmatpush.msra.mxu3 %v2929_v25 }
 0x446   : > { %1288 = vmatpush.msra.mxu3 %v2936_v27 }
 0x448   : > { %1289 = vmatpush.msra.mxu3 %v2942_v29 }
 0x44a   : > { %1290 = vmatpush.msra.mxu3 %v2948_v31 }
 0x44c   : > { %1291 = vmatpush.msra.mxu3 %v2954_v33 }
 0x44e   : > { %1292 = vmatpush.msra.mxu3 %v2960_v38  ;;  %v1224_v40 = vpop.f32.mrf.mxu2 }
 0x44f   : > { %v1225_v41 = vadd.f32 %v2607_v46, %v1224_v40  ;;  %v2006_v46 = vld [vmem:[%s2330_s21 + $0x70] sm:$0xff] }
 0x450   : > { %1293 = vmatpush.msra.mxu3 %v3060_v56  ;;  %1430 = vst [vmem:[#allocation1] ss:$2 sm:$0xff] %v2006_v46  ;;  %v1747_v40 = vld [vmem:[%s3512_s5 + $0xf0] sm:$0xff]  ;;  %v1693_v46 = vld [vmem:[%s3512_s5 + $0xa8] sm:$0xff] }
 0x452   : > { %1294 = vmatpush.msra.mxu3 %v3066_v36 }
 0x454   : > { %1295 = vmatpush.msra.mxu3 %v3072_v0 }
 0x456   : > { %1296 = vmatpush.msra.mxu3 %v3078_v1 }
 0x458   : > { %1297 = vmatpush.msra.mxu3 %v3084_v4 }
 0x45a   : > { %1298 = vmatpush.msra.mxu3 %v3090_v6 }
 0x45b   : > { %1299 = vmatmul.f32.vlgmr.msra.gmra.mxu3 %v1279_v23  ;;  %v1596_v23 = vld [vmem:[%s3512_s5 + $0x58] sm:$0xff] }
 0x45c   : > { %1420 = vmatpush.msrb.mxu3 %v2004_v44  ;;  %v1691_v44 = vld [vmem:[%s3512_s5 + $0x98] sm:$0xff] }
 0x45e   : > { %1421 = vmatpush.msrb.mxu3 %v2003_v45  ;;  %v1741_v45 = vld [vmem:[%s3512_s5 + $0xc0] sm:$0xff] }
 0x460   : > { %1455 = vmatpush.msra.mxu3 %v2861_v58 }
 0x462   : > { %1456 = vmatpush.msra.mxu3 %v2867_v59 }
 0x464   : > { %1457 = vmatpush.msra.mxu3 %v2873_v60 }
 0x466   : > { %1458 = vmatpush.msra.mxu3 %v2881_v63 }
 0x468   : > { %1459 = vmatpush.msra.mxu3 %v2887_v13 }
 0x46a   : > { %1460 = vmatpush.msra.mxu3 %v2987_v32 }
 0x46c   : > { %1461 = vmatpush.msra.mxu3 %v2994_v42 }
 0x46e   : > { %1462 = vmatpush.msra.mxu3 %v3000_v43 }
 0x470   : > { %1463 = vmatpush.msra.mxu3 %v3006_v47 }
 0x472   : > { %1464 = vmatpush.msra.mxu3 %v3012_v49 }
 0x474   : > { %1465 = vmatpush.msra.mxu3 %v3019_v50 }
 0x476   : > { %1466 = vmatpush.msra.mxu3 %v3026_v51 }
 0x478   : > { %1467 = vmatpush.msra.mxu3 %v3033_v52 }
 0x47a   : > { %1468 = vmatpush.msra.mxu3 %v3040_v54 }
 0x47c   : > { %1469 = vmatpush.msra.mxu3 %v3047_v55 }
 0x47e   : > { %1470 = vmatpush.msra.mxu3 %v3126_v61 }
 0x4be   : > { %v1119_v2 = vpop.f32.mrf.mxu3 }
 0x4bf   : > { %v1122_v3 = vadd.f32 %v1119_v2, %v2981_v28 }
 0x4c6   : > { %v1168_v9 = vpop.f32.mrf.mxu3 }
 0x4c7   : > { %v1169_v17 = vadd.f32 %v1168_v9, %v1149_v7  ;;  %v1600_v7 = vld [vmem:[%s3512_s5 + $0x78] sm:$0xff]  ;;  %v1589_v9 = vld [vmem:[%s3512_s5 + $0x20] sm:$0xff] }
 0x4c9   : > { %v1171_v19 = vmax.f32 %v1169_v17, 0.0  ;;  %v1694_v17 = vld [vmem:[%s3512_s5 + $0xb0] sm:$0xff] }
 0x4cb   : > { %1993 = vmatmul.msk.f32.vlgmr.msra.gmra.mxu0 %vm468_vm0, %v1171_v19  ;;  %v1597_v19 = vld [vmem:[%s3512_s5 + $0x60] sm:$0xff] }
 0x4cc   : > { %1359 = vmatpush.msra.mxu0 %v2901_v11 }
 0x4ce   : > { %1360 = vmatpush.msra.mxu0 %v2908_v14 }
 0x4d0   : > { %1361 = vmatpush.msra.mxu0 %v2915_v18 }
 0x4d2   : > { %1362 = vmatpush.msra.mxu0 %v2922_v22 }
 0x4d3   : > { %1243 = vmatmul.f32.vlgmr.msrb.gmra.mxu0 %v1204_v57  ;;  %v1598_v57 = vld [vmem:[%s3512_s5 + $0x68] sm:$0xff] }
 0x4d4   : > { %1363 = vmatpush.msra.mxu0 %v2929_v25 }
 0x4d6   : > { %1364 = vmatpush.msra.mxu0 %v2936_v27 }
 0x4d8   : > { %1365 = vmatpush.msra.mxu0 %v2942_v29 }
 0x4da   : > { %1366 = vmatpush.msra.mxu0 %v2948_v31 }
 0x4dc   : > { %1367 = vmatpush.msra.mxu0 %v2954_v33 }
 0x4de   : > { %1368 = vmatpush.msra.mxu0 %v2960_v38  ;;  %v1300_v8 = vpop.f32.mrf.mxu3 }
 0x4df   : > { %v1301_v12 = vadd.f32 %v3198_v10, %v1300_v8  ;;  %v1819_v8 = vld [vmem:[%s3514_s7 + $0x78] sm:$0xff] }
 0x4e0   : > { %1369 = vmatpush.msra.mxu0 %v3060_v56 }
 0x4e2   : > { %1370 = vmatpush.msra.mxu0 %v3066_v36 }
 0x4e4   : > { %1371 = vmatpush.msra.mxu0 %v3072_v0 }
 0x4e6   : > { %1372 = vmatpush.msra.mxu0 %v3078_v1 }
 0x4e8   : > { %1373 = vmatpush.msra.mxu0 %v3084_v4 }
 0x4ea   : > { %1374 = vmatpush.msra.mxu0 %v3090_v6 }
 0x4eb   : > { %1375 = vmatmul.f32.vlgmr.msra.gmra.mxu0 %v1355_v34  ;;  %v1588_v34 = vld [vmem:[%s3512_s5 + $0x18] sm:$0xff] }
 0x548   : > { %v1195_v16 = vpop.f32.mrf.mxu0 }
 0x549   : > { %v1198_v39 = vadd.f32 %v1195_v16, %v1122_v3  ;;  %v1594_v16 = vld [vmem:[%s3512_s5 + $0x48] sm:$0xff] }
 0x550   : > { %v1244_v21 = vpop.f32.mrf.mxu0 }
 0x551   : > { %v1245_v26 = vadd.f32 %v1244_v21, %v1225_v41  ;;  %v1592_v41 = vld [vmem:[%s3512_s5 + $0x38] sm:$0xff] }
 0x552   : > { %v1695_v21 = vld [vmem:[%s3512_s5 + $0xb8] sm:$0xff] }
 0x553   : > { %v1247_v28 = vmax.f32 %v1245_v26, 0.0  ;;  %v1745_v26 = vld [vmem:[%s3512_s5 + $0xe0] sm:$0xff] }
 0x555   : > { %1997 = vmatmul.msk.f32.vlgmr.msra.gmra.mxu1 %vm468_vm0, %v1247_v28  ;;  %v1590_v28 = vld [vmem:[%s3512_s5 + $0x28] sm:$0xff] }
 0x556   : > { %1435 = vmatpush.msra.mxu1 %v2901_v11 }
 0x558   : > { %1436 = vmatpush.msra.mxu1 %v2908_v14 }
 0x55a   : > { %1437 = vmatpush.msra.mxu1 %v2915_v18 }
 0x55c   : > { %1438 = vmatpush.msra.mxu1 %v2922_v22 }
 0x55d   : > { %1319 = vmatmul.f32.vlgmr.msrb.gmra.mxu1 %v1280_v24  ;;  %v1585_v24 = vld [vmem:[%s3512_s5] sm:$0xff] }
 0x55e   : > { %1439 = vmatpush.msra.mxu1 %v2929_v25 }
 0x560   : > { %1440 = vmatpush.msra.mxu1 %v2936_v27 }
 0x562   : > { %1441 = vmatpush.msra.mxu1 %v2942_v29 }
 0x564   : > { %1442 = vmatpush.msra.mxu1 %v2948_v31 }
 0x566   : > { %1443 = vmatpush.msra.mxu1 %v2954_v33 }
 0x568   : > { %1444 = vmatpush.msra.mxu1 %v2960_v38 }
 0x56a   : > { %1445 = vmatpush.msra.mxu1 %v3060_v56 }
 0x56c   : > { %1446 = vmatpush.msra.mxu1 %v3066_v36 }
 0x56e   : > { %1447 = vmatpush.msra.mxu1 %v3072_v0 }
 0x570   : > { %1448 = vmatpush.msra.mxu1 %v3078_v1 }
 0x572   : > { %1449 = vmatpush.msra.mxu1 %v3084_v4 }
 0x574   : > { %1450 = vmatpush.msra.mxu1 %v3090_v6 }
 0x5d2   : > { %v1271_v48 = vpop.f32.mrf.mxu1 }
 0x5d3   : > { %v1274_v53 = vadd.f32 %v1271_v48, %v1198_v39  ;;  %v1688_v39 = vld [vmem:[%s3512_s5 + $0x80] sm:$0xff]  ;;  %v1586_v48 = vld [vmem:[%s3512_s5 + $0x8] sm:$0xff] }
 0x5da   : > { %v1320_v15 = vpop.f32.mrf.mxu1 }
 0x5db   : > { %v1321_v2 = vadd.f32 %v1320_v15, %v1301_v12  ;;  %v1817_v12 = vld [vmem:[%s3514_s7 + $0x68] sm:$0xff]  ;;  %v1816_v15 = vld [vmem:[%s3514_s7 + $0x60] sm:$0xff] }
 0x5dd   : > { %v1323_v3 = vmax.f32 %v1321_v2, 0.0  ;;  %v2065_v2 = vld [vmem:[%s3511_s4] ss:$0 sm:$0xff] }
 0x5df   : > { %2001 = vmatmul.msk.f32.vlgmr.msrb.gmra.mxu2 %vm468_vm0, %v1323_v3  ;;  %v1815_v3 = vld [vmem:[%s3514_s7 + $0x58] sm:$0xff] }
 0x5e0   : > { %1511 = vmatpush.msrb.mxu2 %v2901_v11  ;;  %v2010_v11 = vld [vmem:[%s2330_s21 + $0x78] sm:$0xff]  ;;  %s1892_s21 = sshll.u32 %s1888_s25, 4  ;;  %s1893_s21 = int_to_ptr.hbm [resolvable:$true] %s1892_s21 }
 0x5e1   : > { %s2113_s14 = sshra.s32 %s1893_s21, 4  ;;  %s2114_s14 = int_to_ptr.hbm [resolvable:$true] %s2113_s14 }
 0x5e2   : > { %1512 = vmatpush.msrb.mxu2 %v2908_v14  ;;  %v1432_v14 = vld.sshfl [vmem:[#allocation1 + $0x8] sm:$0xff pattern:$0x75316420]  ;;  %s2115_s13 = scalar_lea.hbm %s2114_s14, 1  ;;  %p2120_p0 = scmp.lt.s32.totalorder %s2114_s14, %s3516_s9 }
 0x5e3   : > { %p2116_p11 = scmp.ne.s32.totalorder %s2114_s14, %s2115_s13  ;;  %p2121_p1 = scmp.lt.s32.totalorder %s2119_s23, %s2115_s13 }
 0x5e4   : > { %1513 = vmatpush.msrb.mxu2 %v2915_v18  ;;  %v1431_v18 = vld.sshfl [vmem:[#allocation1] sm:$0xff pattern:$0x75316420] }
 0x5e5   : > { %1451 = vmatmul.f32.vlgmr.msra.gmra.mxu1 %v1431_v18  ;;  %1506 = vst [vmem:[#allocation1] ss:$2 sm:$0xff] %v2010_v11  ;;  %v1814_v18 = vld [vmem:[%s3514_s7 + $0x50] sm:$0xff]  ;;  %p2117_p12 = pnand %p2116_p11, %p2251_p5  ;;  %p2122_p2 = por %p2121_p1, %p2120_p0 }
 0x5e6   : > { %1514 = vmatpush.msrb.mxu2 %v2922_v22  ;;  %v2008_v22 = vld [vmem:[%s3510_s3 + $0xe8] sm:$0xff] }
 0x5e7   : > { %1395 = vmatmul.f32.vlgmr.msra.gmra.mxu2 %v1356_v30  ;;  %1496 = vmatpush.msrb.mxu0 %v2008_v22  ;;  %v1743_v30 = vld [vmem:[%s3512_s5 + $0xd0] sm:$0xff]  ;;  %p2118_p13 = pneg %p2117_p12 }
 0x5e8   : > { %1515 = vmatpush.msrb.mxu2 %v2929_v25  ;;  %v2007_v25 = vld [vmem:[%s3510_s3 + $0xe0] sm:$0xff] }
 0x5e9   : > { %1497 = vmatpush.msrb.mxu0 %v2007_v25  ;;  %p2123_p3 = pnand %p2122_p2, %p2118_p13 }
 0x5ea   : > { %1516 = vmatpush.msrb.mxu2 %v2936_v27 }
 0x5eb   : > { %1531 = vmatpush.msra.mxu0 %v2861_v58 }
 0x5ec   : > { %1517 = vmatpush.msrb.mxu2 %v2942_v29 }
 0x5ed   : > { %1532 = vmatpush.msra.mxu0 %v2867_v59 }
 0x5ee   : > { %1518 = vmatpush.msrb.mxu2 %v2948_v31  ;;  %v1376_v31 = vpop.f32.mrf.mxu0 }
 0x5ef   : > { %1533 = vmatpush.msra.mxu0 %v2873_v60  ;;  %v1507_v60 = vld.sshfl [vmem:[#allocation1] sm:$0xff pattern:$0x75316420] }
 0x5f0   : > { %1519 = vmatpush.msrb.mxu2 %v2954_v33  ;;  %v1377_v33 = vadd.f32 %v3198_v10, %v1376_v31  ;;  %v1748_v31 = vld [vmem:[%s3512_s5 + $0xf8] sm:$0xff] }
 0x5f1   : > { %1534 = vmatpush.msra.mxu0 %v2881_v63 }
 0x5f2   : > { %1520 = vmatpush.msrb.mxu2 %v2960_v38 }
 0x5f3   : > { %1535 = vmatpush.msra.mxu0 %v2887_v13 }
 0x5f4   : > { %1521 = vmatpush.msrb.mxu2 %v3060_v56 }
 0x5f5   : > { %1536 = vmatpush.msra.mxu0 %v2987_v32 }
 0x5f6   : > { %1522 = vmatpush.msrb.mxu2 %v3066_v36 }
 0x5f7   : > { %1537 = vmatpush.msra.mxu0 %v2994_v42 }
 0x5f8   : > { %1523 = vmatpush.msrb.mxu2 %v3072_v0 }
 0x5f9   : > { %1538 = vmatpush.msra.mxu0 %v3000_v43 }
 0x5fa   : > { %1524 = vmatpush.msrb.mxu2 %v3078_v1 }
 0x5fb   : > { %1539 = vmatpush.msra.mxu0 %v3006_v47 }
 0x5fc   : > { %1525 = vmatpush.msrb.mxu2 %v3084_v4 }
 0x5fd   : > { %1540 = vmatpush.msra.mxu0 %v3012_v49 }
 0x5fe   : > { %1526 = vmatpush.msrb.mxu2 %v3090_v6  ;;  %v1591_v6 = vld [vmem:[%s3512_s5 + $0x30] sm:$0xff] }
 0x5ff   : > { %1541 = vmatpush.msra.mxu0 %v3019_v50  ;;  %1527 = vmatmul.f32.vlgmr.msrb.gmra.mxu2 %v1507_v60  ;;  %v1508_v50 = vld.sshfl [vmem:[#allocation1 + $0x8] sm:$0xff pattern:$0x75316420] }
 0x600   : > { %1660 = vmatpush.msra.mxu2 %v1591_v6  ;;  %v1742_v60 = vld [vmem:[%s3512_s5 + $0xc8] sm:$0xff]  ;;  %v1826_v6 = vld [vmem:[%s3514_s7 + $0xb0] sm:$0xff] }
 0x601   : > { %1542 = vmatpush.msra.mxu0 %v3026_v51  ;;  %v2012_v51 = vld [vmem:[%s3510_s3 + $0xf8] sm:$0xff] }
 0x602   : > { %1572 = vmatpush.msrb.mxu1 %v2012_v51  ;;  %1661 = vmatpush.msra.mxu2 %v1589_v9  ;;  %v1809_v51 = vld [vmem:[%s3514_s7 + $0x28] sm:$0xff]  ;;  %v1824_v9 = vld [vmem:[%s3514_s7 + $0xa0] sm:$0xff] }
 0x603   : > { %1543 = vmatpush.msra.mxu0 %v3033_v52  ;;  %v2011_v52 = vld [vmem:[%s3510_s3 + $0xf0] sm:$0xff] }
 0x604   : > { %1573 = vmatpush.msrb.mxu1 %v2011_v52  ;;  %v1830_v52 = vld [vmem:[%s3514_s7 + $0xd0] sm:$0xff] }
 0x605   : > { %1544 = vmatpush.msra.mxu0 %v3040_v54 }
 0x606   : > { %1638 = vmatpush.msra.mxu1 %v1600_v7  ;;  %v1825_v7 = vld [vmem:[%s3514_s7 + $0xa8] sm:$0xff] }
 0x607   : > { %1545 = vmatpush.msra.mxu0 %v3047_v55 }
 0x608   : > { %1639 = vmatpush.msra.mxu1 %v1598_v57  ;;  %v1821_v57 = vld [vmem:[%s3514_s7 + $0x88] sm:$0xff] }
 0x609   : > { %1546 = vmatpush.msra.mxu0 %v3126_v61  ;;  %v1587_v61 = vld [vmem:[%s3512_s5 + $0x10] sm:$0xff] }
 0x60a   : > { %1662 = vmatpush.msra.mxu2 %v1587_v61  ;;  %1640 = vmatpush.msra.mxu1 %v1596_v23  ;;  %v1820_v61 = vld [vmem:[%s3514_s7 + $0x80] sm:$0xff] }
 0x60c   : > { %1663 = vmatpush.msra.mxu2 %v1585_v24  ;;  %1641 = vmatpush.msra.mxu1 %v1594_v16  ;;  %v1794_v24 = vld [vmem:[%s3513_s6] sm:$0x3] }
 0x60e   : > { %1764 = vmatpush.msrb.mxu2 %v1747_v40 }
 0x610   : > { %1765 = vmatpush.msrb.mxu2 %v1745_v26 }
 0x612   : > { %1766 = vmatpush.msrb.mxu2 %v1743_v30 }
 0x614   : > { %1767 = vmatpush.msrb.mxu2 %v1741_v45 }
 0x662   : > { %v1347_v27 = vpop.f32.mrf.mxu2  ;;  %v1452_v32 = vpop.f32.mrf.mxu1 }
 0x663   : > { %v1350_v29 = vadd.f32 %v1347_v27, %v1274_v53  ;;  %v1453_v42 = vadd.f32 %v3198_v10, %v1452_v32  ;;  %v1689_v53 = vld [vmem:[%s3512_s5 + $0x88] sm:$0xff]  ;;  %v1812_v32 = vld [vmem:[%s3514_s7 + $0x40] sm:$0xff] }
 0x66a   : > { %v1396_v58 = vpop.f32.mrf.mxu2 }
 0x66b   : > { %v1397_v38 = vadd.f32 %v1396_v58, %v1377_v33  ;;  %v1835_v33 = vld [vmem:[%s3514_s7 + $0xf8] sm:$0xff]  ;;  %v1746_v58 = vld [vmem:[%s3512_s5 + $0xe8] sm:$0xff] }
 0x66d   : > { %v1399_v59 = vmax.f32 %v1397_v38, 0.0  ;;  %v1744_v38 = vld [vmem:[%s3512_s5 + $0xd8] sm:$0xff] }
 0x66f   : > { %2005 = vmatmul.msk.f32.vlgmr.msrb.gmra.mxu3 %vm468_vm0, %v1399_v59 }
 0x670   : > { %1618 = vmatpush.msrb.mxu3 %v1599_v5  ;;  %v1804_v5 = vld [vmem:[%s3514_s7] sm:$0xff] }
 0x672   : > { %1619 = vmatpush.msrb.mxu3 %v1597_v19  ;;  %v1822_v19 = vld [vmem:[%s3514_s7 + $0x90] sm:$0xff] }
 0x674   : > { %1620 = vmatpush.msrb.mxu3 %v1595_v20 }
 0x676   : > { %1621 = vmatpush.msrb.mxu3 %v1593_v37 }
 0x677   : > { %1471 = vmatmul.f32.vlgmr.msra.gmra.mxu3 %v1432_v14 }
 0x678   : > { %1680 = vmatpush.msra.mxu3 %v1592_v41 }
 0x67a   : > { %1681 = vmatpush.msra.mxu3 %v1590_v28 }
 0x67c   : > { %1682 = vmatpush.msra.mxu3 %v1588_v34 }
 0x67e   : > { %1683 = vmatpush.msra.mxu3 %v1586_v48 }
 0x682   : > { %v1528_v56 = vpop.f32.mrf.mxu2 }
 0x683   : > { %v1529_v36 = vadd.f32 %v3198_v10, %v1528_v56  ;;  %v1818_v10 = vld [vmem:[%s3514_s7 + $0x70] sm:$0xff]  ;;  %v1807_v56 = vld [vmem:[%s3514_s7 + $0x18] sm:$0xff] }
 0x6f2   : > { %v1423_v63 = vpop.f32.mrf.mxu3 }
 0x6f3   : > { %v1426_v13 = vadd.f32 %v1423_v63, %v1350_v29  ;;  %v1813_v63 = vld [vmem:[%s3514_s7 + $0x48] sm:$0xff] }
 0x6fa   : > { %v1472_v43 = vpop.f32.mrf.mxu3 }
 0x6fb   : > { %v1473_v47 = vadd.f32 %v1472_v43, %v1453_v42  ;;  %v1833_v42 = vld [vmem:[%s3514_s7 + $0xe8] sm:$0xff]  ;;  %v1811_v43 = vld [vmem:[%s3514_s7 + $0x38] sm:$0xff] }
 0x6fd   : > { %v1475_v49 = vmax.f32 %v1473_v47, 0.0  ;;  %v1832_v47 = vld [vmem:[%s3514_s7 + $0xe0] sm:$0xff] }
 0x6ff   : > { %2009 = vmatmul.msk.f32.vlgmr.msrb.gmra.mxu0 %vm468_vm0, %v1475_v49  ;;  %v1810_v49 = vld [vmem:[%s3514_s7 + $0x30] sm:$0xff] }
 0x700   : > { %1711 = vmatpush.msrb.mxu0 %v1694_v17  ;;  %v1823_v17 = vld [vmem:[%s3514_s7 + $0x98] sm:$0xff] }
 0x702   : > { %1712 = vmatpush.msrb.mxu0 %v1692_v62 }
 0x704   : > { %1713 = vmatpush.msrb.mxu0 %v1690_v35 }
 0x706   : > { %1714 = vmatpush.msrb.mxu0 %v1688_v39  ;;  %v1796_v39 = vperm.slane %v1794_v24, 0 }
 0x707   : > { %1547 = vmatmul.f32.vlgmr.msra.gmra.mxu0 %v1508_v50  ;;  %v1831_v50 = vld [vmem:[%s3514_s7 + $0xd8] sm:$0xff] }
 0x708   : > { %1837 = vmatpush.msra.mxu0 %v1819_v8 }
 0x70a   : > { %1838 = vmatpush.msra.mxu0 %v1818_v10  ;;  %v1836_v10 = vld [vmem:[%s3515_s8] sm:$0x1] }
 0x70c   : > { %1839 = vmatpush.msra.mxu0 %v1817_v12 }
 0x70e   : > { %1840 = vmatpush.msra.mxu0 %v1816_v15 }
 0x710   : > { %1841 = vmatpush.msra.mxu0 %v1815_v3 }
 0x712   : > { %1842 = vmatpush.msra.mxu0 %v1814_v18 }
 0x714   : > { %1843 = vmatpush.msra.mxu0 %v1813_v63 }
 0x716   : > { %1844 = vmatpush.msra.mxu0 %v1812_v32 }
 0x718   : > { %1845 = vmatpush.msra.mxu0 %v1811_v43 }
 0x71a   : > { %1846 = vmatpush.msra.mxu0 %v1810_v49 }
 0x71c   : > { %1847 = vmatpush.msra.mxu0 %v1809_v51 }
 0x77c   : > { %v1499_v54 = vpop.f32.mrf.mxu0 }
 0x77d   : > { %v3261_v55 = vadd.f32 %v1499_v54, %v1426_v13  ;;  %v1834_v13 = vld [vmem:[%s3514_s7 + $0xf0] sm:$0xff]  ;;  %v1808_v54 = vld [vmem:[%s3514_s7 + $0x20] sm:$0xff] }
 0x77e   : > { %1848 = vmatpush.msra.mxu0 %v1808_v54 }
 0x780   : > { %1849 = vmatpush.msra.mxu0 %v1807_v56 }
 0x784   : > { %v1548_v0 = vpop.f32.mrf.mxu0 }
 0x785   : > { %v1549_v1 = vadd.f32 %v1548_v0, %v1529_v36  ;;  %v1828_v36 = vld [vmem:[%s3514_s7 + $0xc0] sm:$0xff]  ;;  %v1806_v0 = vld [vmem:[%s3514_s7 + $0x10] sm:$0xff] }
 0x786   : > { %1850 = vmatpush.msra.mxu0 %v1806_v0 }
 0x787   : > { %v1551_v4 = vmax.f32 %v1549_v1, 0.0  ;;  %v1827_v1 = vld [vmem:[%s3514_s7 + $0xb8] sm:$0xff] }
 0x789   : > { %2013 = vmatmul.msk.f32.vlgmr.msrb.gmra.mxu1 %vm468_vm0, %v1551_v4  ;;  %v1805_v4 = vld [vmem:[%s3514_s7 + $0x8] sm:$0xff] }
 0x78a   : > { %1731 = vmatpush.msrb.mxu1 %v1695_v21  ;;  %1851 = vmatpush.msra.mxu0 %v1805_v4 }
 0x78c   : > { %1732 = vmatpush.msrb.mxu1 %v1693_v46  ;;  %1852 = vmatpush.msra.mxu0 %v1804_v5 }
 0x78e   : > { %1733 = vmatpush.msrb.mxu1 %v1691_v44  ;;  %v1797_v44 = vperm.slane %v1794_v24, 1 }
 0x790   : > { %1734 = vmatpush.msrb.mxu1 %v1689_v53 }
 0x806   : > { %v1575_v11 = vpop.f32.mrf.mxu1 }
 0x807   : > { %v1578_v14 = vadd.f32 %v1575_v11, %v3261_v55  ;;  %v1829_v55 = vld [vmem:[%s3514_s7 + $0xc8] sm:$0xff] }
 0x809   : > { %v1583_v22 = vadd.f32 %v2065_v2, %v1578_v14 }
 0x80b   : > { %v1584_v25 = vmax.f32 %v1583_v22, 0.0 }
 0x80d   : > { %2016 = vmatmul.msk.f32.vlgmr.msra.gmra.mxu2 %vm1603_vm1, %v1584_v25  ;;  %v1602_v27 = vrot.slane %v1584_v25, 1  ;;  %v1696_v29 = vrot.slane %v1584_v25, 2  ;;  %v1749_v59 = vrot.slane %v1584_v25, 3 }
 0x80f   : > { %2014 = vmatmul.msk.f32.vlgmr.msrb.gmra.mxu3 %vm1603_vm1, %v1602_v27  ;;  %2015 = vmatmul.msk.f32.vlgmr.msra.gmra.mxu1 %vm1603_vm1, %v1602_v27 }
 0x810   : > { %2018 = vmatmul.msk.f32.vlgmr.msrb.gmra.mxu0 %vm1603_vm1, %v1696_v29  ;;  %1784 = vmatpush.msrb.mxu3 %v1748_v31 }
 0x811   : > { %1857 = vmatpush.msra.mxu1 %v1835_v33 }
 0x812   : > { %1785 = vmatpush.msrb.mxu3 %v1746_v58 }
 0x813   : > { %1858 = vmatpush.msra.mxu1 %v1834_v13 }
 0x814   : > { %1786 = vmatpush.msrb.mxu3 %v1744_v38 }
 0x815   : > { %2020 = vmatmul.msk.f32.vlgmr.msrb.gmra.mxu2 %vm1603_vm1, %v1749_v59  ;;  %1859 = vmatpush.msra.mxu1 %v1833_v42 }
 0x816   : > { %1787 = vmatpush.msrb.mxu3 %v1742_v60 }
 0x817   : > { %2017 = vmatmul.msk.f32.vlgmr.msra.gmra.mxu3 %vm1603_vm1, %v1584_v25  ;;  %2019 = vmatmul.msk.f32.vlgmr.msrb.gmra.mxu1 %vm1603_vm1, %v1696_v29 }
 0x818   : > { %1860 = vmatpush.msra.mxu1 %v1832_v47 }
 0x81a   : > { %1861 = vmatpush.msra.mxu1 %v1831_v50 }
 0x81c   : > { %1862 = vmatpush.msra.mxu1 %v1830_v52 }
 0x81e   : > { %1863 = vmatpush.msra.mxu1 %v1829_v55 }
 0x81f   : > { %2021 = vmatmul.msk.f32.vlgmr.msrb.gmra.mxu3 %vm1603_vm1, %v1749_v59 }
 0x820   : > { %1864 = vmatpush.msra.mxu1 %v1828_v36 }
 0x822   : > { %1865 = vmatpush.msra.mxu1 %v1827_v1 }
 0x824   : > { %1866 = vmatpush.msra.mxu1 %v1826_v6 }
 0x826   : > { %1867 = vmatpush.msra.mxu1 %v1825_v7 }
 0x828   : > { %1868 = vmatpush.msra.mxu1 %v1824_v9 }
 0x82a   : > { %1869 = vmatpush.msra.mxu1 %v1823_v17 }
 0x82c   : > { %1870 = vmatpush.msra.mxu1 %v1822_v19 }
 0x82e   : > { %1871 = vmatpush.msra.mxu1 %v1821_v57 }
 0x830   : > { %1872 = vmatpush.msra.mxu1 %v1820_v61 }
 0x88c   : > { %v1643_v35 = vpop.f32.mrf.mxu1 }
 0x88d   : > { %v1716_v37 = vpop.f32.mrf.mxu0 }
 0x890   : > { %v1665_v62 = vpop.f32.mrf.mxu2 }
 0x892   : > { %v1623_v20 = vpop.f32.mrf.mxu3 }
 0x893   : > { %v1666_v23 = vadd.f32 %v1665_v62, %v1623_v20 }
 0x894   : > { %v1736_v30 = vpop.f32.mrf.mxu1 }
 0x895   : > { %v1739_v16 = vadd.f32 %v1716_v37, %v1666_v23 }
 0x898   : > { %v1769_v40 = vpop.f32.mrf.mxu2 }
 0x899   : > { %v1792_v41 = vadd.f32 %v1769_v40, %v1739_v16 }
 0x89a   : > { %v1685_v21 = vpop.f32.mrf.mxu3 }
 0x89b   : > { %v1800_v26 = vadd.f32 %v1796_v39, %v1792_v41  ;;  %v1686_v46 = vadd.f32 %v1685_v21, %v1643_v35 }
 0x89d   : > { %v1802_v28 = vmax.f32 %v1800_v26, 0.0  ;;  %v1740_v34 = vadd.f32 %v1736_v30, %v1686_v46 }
 0x89f   : > { %1853 = vmatmul.f32.vlgmr.msra.gmra.mxu0 %v1802_v28 }
 0x8a2   : > { %v1789_v45 = vpop.f32.mrf.mxu3 }
 0x8a3   : > { %v1793_v48 = vadd.f32 %v1789_v45, %v1740_v34 }
 0x8a5   : > { %v1801_v53 = vadd.f32 %v1797_v44, %v1793_v48 }
 0x8a7   : > { %v1803_v8 = vmax.f32 %v1801_v53, 0.0 }
 0x8a9   : > { %1873 = vmatmul.f32.vlgmr.msra.gmra.mxu1 %v1803_v8 }
 0x91c   : > { %v1854_v12 = vpop.f32.mrf.mxu0 }
 0x91d   : > { %v1855_v15 = vadd.f32 %v1854_v12, %v1836_v10 }
 0x926   : > { %v1874_v2 = vpop.f32.mrf.mxu1 }
 0x927   : > { %v1875_v3 = vadd.f32 %v1874_v2, %v1855_v15 }
 0x929   : > { %1878 = vst.msk [vmem:[%s324_s27] sm:$0x1] %vm1877_vm2, %v1875_v3 }
 0x92a   : > { %2126 = shalt.err (!%p2123_p3)
}
 0x92b   : > { %2025 = dma.vmem_to_hbm [thread:$0]  (%p2251_p5), %s1891_s28, 16, %s1893_s21, %s1880_s29  }
 0x92c PF: > { %p2031_p4 = scmp.ge.s32.totalorder %s2161_s12, 2  ;;  %s1904_s17 = sand.u32 1, %s2149_s30  }
 0x92d   : > { %s1905_s24 = scalar_lea.sflag [#allocation3], %s1904_s17 }
 0x92e   : > { %p2028_p7 = pnand %p2031_p4, %p2255_p6 }
 0x930   : > { %p2029_p8 = pneg %p2028_p7 }
 0x932   : > { %2144 = dma.done.wait (%p2029_p8), %s1905_s24, 16  }
 0x933   : > { %2146 = vsyncadd (%p2029_p8), %s1905_s24, 4294967280  ;;  %p19_p9 = scmp.ge.s32.totalorder %s2238_s15, 4   ;;  %s3519_s30 = smov %s2153_s10 }
 0x934   : > { %s3520_s10 = smov %s2157_s11  ;;  %s3521_s11 = smov %s2249_s18 }
 0x935   : > { %s3522_s12 = smov %s2238_s15  ;;  %21 = sbr.rel (!%p19_p9) target bundleno = 3 (0x3), region = 121 }
 0x93a   :  { %1910 = vsyncpa [#allocation3], 1 }
 0x93b   :  { %1912 = vsyncpa [#allocation3 + $0x1], 1 }

</bundles_post_ra>
